<compile_context>
chip_gen: v6e
topology: v6e:2x2x1
jax: 0.10.0
libtpu: 0.0.40
codegen_flags: <defaults>
</compile_context>

<pallas_src>
import functools
import numpy as np
import jax
import jax.numpy as jnp
from jax.experimental import pallas as pl
from jax.experimental.pallas import tpu as pltpu

LANES = 128
ROWS_CAP = 1024   # ~6 MiB double-buffered pipeline footprint; safe on v5e/v6e/v7x


def _cdiv(a, b):
    return (a + b - 1) // b


def _points_kernel(params_ref, xcor_ref, ycor_ref, depth_ref, out_ref):
    """Undistort + unproject + rigid-transform a (rows, 128) pixel tile."""
    b = pl.program_id(1)                 # batch is the inner grid axis

    # Per-batch scalar parameters (SMEM, layout built in _forward_points):
    #  0-5 : K^-1 rows 0,1      6-8 : d0,d1,d4 (denominator)
    #  9-11: d5,d6,d7 (numer.) 12-17: 2*d2, 2*d3, d3+d8, d2+d10, d9, d11
    # 18-29: first 3 rows of T = trans @ M^-1 / metric
    k00 = params_ref[b, 0]
    k01 = params_ref[b, 1]
    k02 = params_ref[b, 2]
    k10 = params_ref[b, 3]
    k11 = params_ref[b, 4]
    k12 = params_ref[b, 5]
    d0 = params_ref[b, 6]
    d1 = params_ref[b, 7]
    d4 = params_ref[b, 8]
    d5 = params_ref[b, 9]
    d6 = params_ref[b, 10]
    d7 = params_ref[b, 11]
    c2 = params_ref[b, 12]    # 2*d2
    c3 = params_ref[b, 13]    # 2*d3
    cX = params_ref[b, 14]    # d3 + d8
    cY = params_ref[b, 15]    # d2 + d10
    d9 = params_ref[b, 16]
    d11 = params_ref[b, 17]
    t = [params_ref[b, 18 + i] for i in range(12)]

    x = xcor_ref[...]        # (rows, 128) f32, pixel x coord (scaled)
    y = ycor_ref[...]        # (rows, 128) f32, pixel y coord (scaled)
    d = depth_ref[...]       # (rows, 128) f32, predicted depth

    # norm_2d = K^-1 @ [x, y, 1]  (rows 0 and 1 only, as in the torch code)
    xn = k00 * x + k01 * y + k02
    yn = k10 * x + k11 * y + k12

    xd = xn
    yd = yn
    # 5 fixed-point undistortion iterations (Python-unrolled, same as torch).
    for _ in range(5):
        xd2 = xd * xd
        yd2 = yd * yd
        xy = xd * yd
        r2 = xd2 + yd2
        r4 = r2 * r2
        num = 1.0 + ((d7 * r2 + d6) * r2 + d5) * r2
        den = 1.0 + ((d4 * r2 + d1) * r2 + d0) * r2
        r = pl.reciprocal(den, approx=True)       # EUP slot (otherwise idle)
        r = r * (2.0 - den * r)                   # one Newton step -> ~f32 exact
        icdist = num * r
        # deltaX = 2*d2*xd*yd + d3*(r2 + 2*xd^2) + d8*r2 + d9*r4  (folded)
        deltaX = c2 * xy + c3 * xd2 + cX * r2 + d9 * r4
        # deltaY = d2*(r2 + 2*yd^2) + 2*d3*xd*yd + d10*r2 + d11*r4 (folded)
        deltaY = c3 * xy + c2 * yd2 + cY * r2 + d11 * r4
        xd = (xn - deltaX) * icdist
        yd = (yn - deltaY) * icdist

    X = xd * d
    Y = yd * d
    Z = d

    # point = (trans @ M^-1 / metric) @ [X, Y, Z, 1]  (first 3 rows).
    # Scalar-broadcast VPU ops (contraction dim 3/4 -> MXU would be wasted).
    # Direct whole-slab row stores (lane-dense, no masked stores).
    out_ref[0] = t[0] * X + t[1] * Y + t[2] * Z + t[3]
    out_ref[1] = t[4] * X + t[5] * Y + t[6] * Z + t[7]
    out_ref[2] = t[8] * X + t[9] * Y + t[10] * Z + t[11]


def _compute_points(params, xcor, ycor, depth_tiles, rows):
    B, NR, _ = depth_tiles.shape          # NR is already a multiple of rows
    n_tiles = NR // rows
    grid = (n_tiles, B)                   # batch innermost: x/y tiles not re-DMA'd
    return pl.pallas_call(
        _points_kernel,
        out_shape=jax.ShapeDtypeStruct((B, 3, NR, LANES), jnp.float32),
        grid_spec=pltpu.PrefetchScalarGridSpec(
            num_scalar_prefetch=0,
            grid=grid,
            in_specs=[
                pl.BlockSpec(memory_space=pltpu.MemorySpace.SMEM),      # params (B, 30)
                pl.BlockSpec((rows, LANES), lambda j, b: (j, 0)),       # x_cor
                pl.BlockSpec((rows, LANES), lambda j, b: (j, 0)),       # y_cor
                pl.BlockSpec((pl.Squeezed(), rows, LANES),
                             lambda j, b: (b, j, 0)),                   # depth
            ],
            out_specs=pl.BlockSpec((pl.Squeezed(), 3, rows, LANES),
                                   lambda j, b: (b, 0, j, 0)),
        ),
        compiler_params=pltpu.CompilerParams(
            dimension_semantics=("parallel", "parallel")),
    )(params, xcor, ycor, depth_tiles)


def _tile_rows(nr0, B):
    """Tile height: multiple of 8, <= ROWS_CAP; keep >= 2 total grid steps
    when possible so both v7x TensorCores get work."""
    rows = min(nr0, ROWS_CAP)
    rows = _cdiv(rows, 8) * 8
    while B * _cdiv(nr0, rows) < 2 and rows > 8:
        rows = max(8, _cdiv(rows // 2, 8) * 8)
    return rows


@functools.partial(jax.jit, static_argnames=("orig_W", "orig_H", "metric"))
def _forward_points(pred_depth, K_matrix, M_matrix, diff, trans_matrix,
                    orig_W, orig_H, metric):
    pred_depth = pred_depth[:, 0]            # squeeze(1) -> (B, H, W)
    B, H, W = pred_depth.shape
    N = H * W

    # Pad pixel axis to whole (8, 128) vreg tiles, then up to whole grid tiles.
    nr0 = _cdiv(max(8, _cdiv(N, LANES)), 8) * 8
    rows = _tile_rows(nr0, B)
    nr = _cdiv(nr0, rows) * rows             # rows need not divide nr0
    n_pad = nr * LANES

    # Pixel grid (matches torch meshgrid 'ij' + transpose + offsets/scales):
    # flattened index n = h*W + w -> x = (w+71)*(orig_W/480), y = h*(orig_H/H)
    w_idx = jnp.arange(W, dtype=jnp.float32)
    h_idx = jnp.arange(H, dtype=jnp.float32)
    x_cor = jnp.broadcast_to((w_idx[None, :] + 71.0) * (orig_W / 480.0), (H, W))
    y_cor = jnp.broadcast_to(h_idx[:, None] * (orig_H / H), (H, W))
    x_flat = jnp.pad(x_cor.reshape(N), (0, n_pad - N)).reshape(nr, LANES)
    y_flat = jnp.pad(y_cor.reshape(N), (0, n_pad - N)).reshape(nr, LANES)

    depth_flat = jnp.pad(pred_depth.reshape(B, N).astype(jnp.float32),
                         ((0, 0), (0, n_pad - N))).reshape(B, nr, LANES)

    Kinv = jnp.linalg.inv(K_matrix.astype(jnp.float32))               # (B, 3, 3)
    Minv = jnp.linalg.inv(M_matrix.astype(jnp.float32))               # (B, 4, 4)
    T = jnp.matmul(trans_matrix.astype(jnp.float32), Minv) / metric   # (B, 4, 4)
    df = diff.astype(jnp.float32).reshape(B, 12)
    params = jnp.concatenate(
        [Kinv[:, 0, :], Kinv[:, 1, :],                        # 6
         df[:, 0:1], df[:, 1:2], df[:, 4:5],                  # denominator d0,d1,d4
         df[:, 5:6], df[:, 6:7], df[:, 7:8],                  # numerator   d5,d6,d7
         2.0 * df[:, 2:3], 2.0 * df[:, 3:4],                  # 2*d2, 2*d3
         df[:, 3:4] + df[:, 8:9],                             # d3 + d8
         df[:, 2:3] + df[:, 10:11],                           # d2 + d10
         df[:, 9:10], df[:, 11:12],                           # d9, d11
         T[:, :3, :].reshape(B, 12)], axis=-1)                # (B, 30)

    pts = _compute_points(params, x_flat, y_flat, depth_flat, rows)    # (B,3,nr,128)
    return pts.reshape(B, 3, n_pad)[..., :N]                           # (B, 3, N)


def get_3d_points_forward(pred_depth, filter_mask, K_matrix, M_matrix, diff,
                          trans_matrix, total_points, feature_input,
                          orig_W, orig_H, metric=100):
    pts = _forward_points(pred_depth, K_matrix, M_matrix, diff, trans_matrix,
                          float(orig_W), float(orig_H), float(metric))
    pts = np.asarray(jax.block_until_ready(pts))           # (B, 3, N)
    B = pts.shape[0]
    C = feature_input.shape[1]
    # Features never touch the kernel: no device-side concat / extra HBM copy.
    feat = np.asarray(feature_input).reshape(B, C, -1)      # (B, C, N)
    # TODO(synk): torch.where dynamic-size gather + list append has no
    # Pallas/JIT equivalent (data-dependent output shapes); done host-side.
    for hm_idx in range(len(filter_mask)):
        mask = np.asarray(filter_mask[hm_idx]).reshape(B, -1)
        for b in range(B):
            idx = np.where(mask[b] == 1)[0]
            filter_pc = np.concatenate(
                [pts[b][:, idx].T, feat[b][:, idx].T], axis=-1)  # (n_sel, 3+C)
            total_points[hm_idx][b].append(filter_pc)
    return total_points


if __name__ == "__main__":
    key = jax.random.PRNGKey(0)
    B, C, H, W = 2, 4, 16, 16
    orig_W, orig_H = 1920, 1080
    num_joints = 3

    k1, k2, k3, k4 = jax.random.split(key, 4)
    pred_depth = jax.random.uniform(k1, (B, 1, H, W), jnp.float32) * 5.0 + 1.0
    feature_input = jax.random.normal(k2, (B, C, H, W), dtype=jnp.float32)

    K_matrix = jnp.broadcast_to(
        jnp.array([[1000.0, 0.0, 960.0],
                   [0.0, 1000.0, 540.0],
                   [0.0, 0.0, 1.0]], dtype=jnp.float32), (B, 3, 3))
    M_matrix = jnp.tile(jnp.eye(4, dtype=jnp.float32)[None], (B, 1, 1))
    M_matrix = M_matrix.at[:, :3, 3].set(
        jnp.array([[10.0, 20.0, 30.0]] * B, dtype=jnp.float32))
    trans_matrix = jnp.tile(jnp.eye(4, dtype=jnp.float32)[None], (B, 1, 1))
    diff = jax.random.normal(k3, (B, 12), dtype=jnp.float32) * 0.01

    filter_mask = [
        (jax.random.uniform(jax.random.fold_in(k4, j), (B, H, W)) > 0.7
         ).astype(jnp.int32)
        for j in range(num_joints)
    ]
    total_points = [[[] for _ in range(B)] for _ in range(num_joints)]

    out = get_3d_points_forward(pred_depth, filter_mask, K_matrix, M_matrix,
                                diff, trans_matrix, total_points,
                                feature_input, orig_W, orig_H, metric=100)
    # touch result to make sure everything materialized
    _ = out[0][0][0].shape
    print("KERNEL_OK")
</pallas_src>

<mosaic_0001>
module attributes {stable_mosaic.version = 11 : i64} {
  func.func @_points_kernel(%arg0: i32, %arg1: i32, %arg2: memref<2x30xf32, #tpu.memory_space<smem>>, %arg3: memref<8x128xf32, #tpu.memory_space<vmem>>, %arg4: memref<8x128xf32, #tpu.memory_space<vmem>>, %arg5: memref<1x8x128xf32, #tpu.memory_space<vmem>>, %arg6: memref<1x3x8x128xf32, #tpu.memory_space<vmem>>) attributes {dimension_semantics = [#tpu.dimension_semantics<parallel>, #tpu.dimension_semantics<parallel>], iteration_bounds = array<i64: 1, 2>, scalar_prefetch = 0 : i64, scratch_operands = 0 : i64, tpu.core_type = #tpu.core_type<tc>, window_params = [{transform_indices = @transform_0, window_bounds = array<i64: 2, 30>}, {transform_indices = @transform_1, window_bounds = array<i64: 8, 128>}, {transform_indices = @transform_2, window_bounds = array<i64: 8, 128>}, {transform_indices = @transform_3, window_bounds = array<i64: 1, 8, 128>}, {transform_indices = @transform_4, window_bounds = array<i64: 1, 3, 8, 128>}]} {
    %0 = arith.index_cast %arg1 : i32 to index
    %c0 = arith.constant 0 : index
    %1 = memref.load %arg2[%0, %c0] : memref<2x30xf32, #tpu.memory_space<smem>>
    %2 = arith.index_cast %arg1 : i32 to index
    %c1 = arith.constant 1 : index
    %3 = memref.load %arg2[%2, %c1] : memref<2x30xf32, #tpu.memory_space<smem>>
    %4 = arith.index_cast %arg1 : i32 to index
    %c2 = arith.constant 2 : index
    %5 = memref.load %arg2[%4, %c2] : memref<2x30xf32, #tpu.memory_space<smem>>
    %6 = arith.index_cast %arg1 : i32 to index
    %c3 = arith.constant 3 : index
    %7 = memref.load %arg2[%6, %c3] : memref<2x30xf32, #tpu.memory_space<smem>>
    %8 = arith.index_cast %arg1 : i32 to index
    %c4 = arith.constant 4 : index
    %9 = memref.load %arg2[%8, %c4] : memref<2x30xf32, #tpu.memory_space<smem>>
    %10 = arith.index_cast %arg1 : i32 to index
    %c5 = arith.constant 5 : index
    %11 = memref.load %arg2[%10, %c5] : memref<2x30xf32, #tpu.memory_space<smem>>
    %12 = arith.index_cast %arg1 : i32 to index
    %c6 = arith.constant 6 : index
    %13 = memref.load %arg2[%12, %c6] : memref<2x30xf32, #tpu.memory_space<smem>>
    %14 = arith.index_cast %arg1 : i32 to index
    %c7 = arith.constant 7 : index
    %15 = memref.load %arg2[%14, %c7] : memref<2x30xf32, #tpu.memory_space<smem>>
    %16 = arith.index_cast %arg1 : i32 to index
    %c8 = arith.constant 8 : index
    %17 = memref.load %arg2[%16, %c8] : memref<2x30xf32, #tpu.memory_space<smem>>
    %18 = arith.index_cast %arg1 : i32 to index
    %c9 = arith.constant 9 : index
    %19 = memref.load %arg2[%18, %c9] : memref<2x30xf32, #tpu.memory_space<smem>>
    %20 = arith.index_cast %arg1 : i32 to index
    %c10 = arith.constant 10 : index
    %21 = memref.load %arg2[%20, %c10] : memref<2x30xf32, #tpu.memory_space<smem>>
    %22 = arith.index_cast %arg1 : i32 to index
    %c11 = arith.constant 11 : index
    %23 = memref.load %arg2[%22, %c11] : memref<2x30xf32, #tpu.memory_space<smem>>
    %24 = arith.index_cast %arg1 : i32 to index
    %c12 = arith.constant 12 : index
    %25 = memref.load %arg2[%24, %c12] : memref<2x30xf32, #tpu.memory_space<smem>>
    %26 = arith.index_cast %arg1 : i32 to index
    %c13 = arith.constant 13 : index
    %27 = memref.load %arg2[%26, %c13] : memref<2x30xf32, #tpu.memory_space<smem>>
    %28 = arith.index_cast %arg1 : i32 to index
    %c14 = arith.constant 14 : index
    %29 = memref.load %arg2[%28, %c14] : memref<2x30xf32, #tpu.memory_space<smem>>
    %30 = arith.index_cast %arg1 : i32 to index
    %c15 = arith.constant 15 : index
    %31 = memref.load %arg2[%30, %c15] : memref<2x30xf32, #tpu.memory_space<smem>>
    %32 = arith.index_cast %arg1 : i32 to index
    %c16 = arith.constant 16 : index
    %33 = memref.load %arg2[%32, %c16] : memref<2x30xf32, #tpu.memory_space<smem>>
    %34 = arith.index_cast %arg1 : i32 to index
    %c17 = arith.constant 17 : index
    %35 = memref.load %arg2[%34, %c17] : memref<2x30xf32, #tpu.memory_space<smem>>
    %36 = arith.index_cast %arg1 : i32 to index
    %c18 = arith.constant 18 : index
    %37 = memref.load %arg2[%36, %c18] : memref<2x30xf32, #tpu.memory_space<smem>>
    %38 = arith.index_cast %arg1 : i32 to index
    %c19 = arith.constant 19 : index
    %39 = memref.load %arg2[%38, %c19] : memref<2x30xf32, #tpu.memory_space<smem>>
    %40 = arith.index_cast %arg1 : i32 to index
    %c20 = arith.constant 20 : index
    %41 = memref.load %arg2[%40, %c20] : memref<2x30xf32, #tpu.memory_space<smem>>
    %42 = arith.index_cast %arg1 : i32 to index
    %c21 = arith.constant 21 : index
    %43 = memref.load %arg2[%42, %c21] : memref<2x30xf32, #tpu.memory_space<smem>>
    %44 = arith.index_cast %arg1 : i32 to index
    %c22 = arith.constant 22 : index
    %45 = memref.load %arg2[%44, %c22] : memref<2x30xf32, #tpu.memory_space<smem>>
    %46 = arith.index_cast %arg1 : i32 to index
    %c23 = arith.constant 23 : index
    %47 = memref.load %arg2[%46, %c23] : memref<2x30xf32, #tpu.memory_space<smem>>
    %48 = arith.index_cast %arg1 : i32 to index
    %c24 = arith.constant 24 : index
    %49 = memref.load %arg2[%48, %c24] : memref<2x30xf32, #tpu.memory_space<smem>>
    %50 = arith.index_cast %arg1 : i32 to index
    %c25 = arith.constant 25 : index
    %51 = memref.load %arg2[%50, %c25] : memref<2x30xf32, #tpu.memory_space<smem>>
    %52 = arith.index_cast %arg1 : i32 to index
    %c26 = arith.constant 26 : index
    %53 = memref.load %arg2[%52, %c26] : memref<2x30xf32, #tpu.memory_space<smem>>
    %54 = arith.index_cast %arg1 : i32 to index
    %c27 = arith.constant 27 : index
    %55 = memref.load %arg2[%54, %c27] : memref<2x30xf32, #tpu.memory_space<smem>>
    %56 = arith.index_cast %arg1 : i32 to index
    %c28 = arith.constant 28 : index
    %57 = memref.load %arg2[%56, %c28] : memref<2x30xf32, #tpu.memory_space<smem>>
    %58 = arith.index_cast %arg1 : i32 to index
    %c29 = arith.constant 29 : index
    %59 = memref.load %arg2[%58, %c29] : memref<2x30xf32, #tpu.memory_space<smem>>
    %c0_0 = arith.constant 0 : index
    %c0_1 = arith.constant 0 : index
    %60 = vector.load %arg3[%c0_0, %c0_1] : memref<8x128xf32, #tpu.memory_space<vmem>>, vector<8x128xf32>
    %c0_2 = arith.constant 0 : index
    %c0_3 = arith.constant 0 : index
    %61 = vector.load %arg4[%c0_2, %c0_3] : memref<8x128xf32, #tpu.memory_space<vmem>>, vector<8x128xf32>
    %c0_4 = arith.constant 0 : index
    %c0_5 = arith.constant 0 : index
    %c0_6 = arith.constant 0 : index
    %62 = vector.load %arg5[%c0_4, %c0_5, %c0_6] : memref<1x8x128xf32, #tpu.memory_space<vmem>>, vector<1x8x128xf32>
    %63 = vector.shape_cast %62 : vector<1x8x128xf32> to vector<8x128xf32>
    %64 = vector.broadcast %1 : f32 to vector<8x128xf32>
    %65 = arith.mulf %64, %60 : vector<8x128xf32>
    %66 = vector.broadcast %3 : f32 to vector<8x128xf32>
    %67 = arith.mulf %66, %61 : vector<8x128xf32>
    %68 = arith.addf %65, %67 : vector<8x128xf32>
    %69 = vector.broadcast %5 : f32 to vector<8x128xf32>
    %70 = arith.addf %68, %69 : vector<8x128xf32>
    %71 = vector.broadcast %7 : f32 to vector<8x128xf32>
    %72 = arith.mulf %71, %60 : vector<8x128xf32>
    %73 = vector.broadcast %9 : f32 to vector<8x128xf32>
    %74 = arith.mulf %73, %61 : vector<8x128xf32>
    %75 = arith.addf %72, %74 : vector<8x128xf32>
    %76 = vector.broadcast %11 : f32 to vector<8x128xf32>
    %77 = arith.addf %75, %76 : vector<8x128xf32>
    %78 = arith.mulf %70, %70 : vector<8x128xf32>
    %79 = arith.mulf %77, %77 : vector<8x128xf32>
    %80 = arith.mulf %70, %77 : vector<8x128xf32>
    %81 = arith.addf %78, %79 : vector<8x128xf32>
    %82 = arith.mulf %81, %81 : vector<8x128xf32>
    %83 = vector.broadcast %23 : f32 to vector<8x128xf32>
    %84 = arith.mulf %83, %81 : vector<8x128xf32>
    %85 = vector.broadcast %21 : f32 to vector<8x128xf32>
    %86 = arith.addf %84, %85 : vector<8x128xf32>
    %87 = arith.mulf %86, %81 : vector<8x128xf32>
    %88 = vector.broadcast %19 : f32 to vector<8x128xf32>
    %89 = arith.addf %87, %88 : vector<8x128xf32>
    %90 = arith.mulf %89, %81 : vector<8x128xf32>
    %cst = arith.constant 1.000000e+00 : f32
    %91 = vector.broadcast %cst : f32 to vector<8x128xf32>
    %92 = arith.addf %91, %90 : vector<8x128xf32>
    %93 = vector.broadcast %17 : f32 to vector<8x128xf32>
    %94 = arith.mulf %93, %81 : vector<8x128xf32>
    %95 = vector.broadcast %15 : f32 to vector<8x128xf32>
    %96 = arith.addf %94, %95 : vector<8x128xf32>
    %97 = arith.mulf %96, %81 : vector<8x128xf32>
    %98 = vector.broadcast %13 : f32 to vector<8x128xf32>
    %99 = arith.addf %97, %98 : vector<8x128xf32>
    %100 = arith.mulf %99, %81 : vector<8x128xf32>
    %cst_7 = arith.constant 1.000000e+00 : f32
    %101 = vector.broadcast %cst_7 : f32 to vector<8x128xf32>
    %102 = arith.addf %101, %100 : vector<8x128xf32>
    %103 = tpu.reciprocal %102 {approx = true} : vector<8x128xf32> -> vector<8x128xf32>
    %104 = arith.mulf %102, %103 : vector<8x128xf32>
    %cst_8 = arith.constant 2.000000e+00 : f32
    %105 = vector.broadcast %cst_8 : f32 to vector<8x128xf32>
    %106 = arith.subf %105, %104 : vector<8x128xf32>
    %107 = arith.mulf %103, %106 : vector<8x128xf32>
    %108 = arith.mulf %92, %107 : vector<8x128xf32>
    %109 = vector.broadcast %25 : f32 to vector<8x128xf32>
    %110 = arith.mulf %109, %80 : vector<8x128xf32>
    %111 = vector.broadcast %27 : f32 to vector<8x128xf32>
    %112 = arith.mulf %111, %78 : vector<8x128xf32>
    %113 = arith.addf %110, %112 : vector<8x128xf32>
    %114 = vector.broadcast %29 : f32 to vector<8x128xf32>
    %115 = arith.mulf %114, %81 : vector<8x128xf32>
    %116 = arith.addf %113, %115 : vector<8x128xf32>
    %117 = vector.broadcast %33 : f32 to vector<8x128xf32>
    %118 = arith.mulf %117, %82 : vector<8x128xf32>
    %119 = arith.addf %116, %118 : vector<8x128xf32>
    %120 = vector.broadcast %27 : f32 to vector<8x128xf32>
    %121 = arith.mulf %120, %80 : vector<8x128xf32>
    %122 = vector.broadcast %25 : f32 to vector<8x128xf32>
    %123 = arith.mulf %122, %79 : vector<8x128xf32>
    %124 = arith.addf %121, %123 : vector<8x128xf32>
    %125 = vector.broadcast %31 : f32 to vector<8x128xf32>
    %126 = arith.mulf %125, %81 : vector<8x128xf32>
    %127 = arith.addf %124, %126 : vector<8x128xf32>
    %128 = vector.broadcast %35 : f32 to vector<8x128xf32>
    %129 = arith.mulf %128, %82 : vector<8x128xf32>
    %130 = arith.addf %127, %129 : vector<8x128xf32>
    %131 = arith.subf %70, %119 : vector<8x128xf32>
    %132 = arith.mulf %131, %108 : vector<8x128xf32>
    %133 = arith.subf %77, %130 : vector<8x128xf32>
    %134 = arith.mulf %133, %108 : vector<8x128xf32>
    %135 = arith.mulf %132, %132 : vector<8x128xf32>
    %136 = arith.mulf %134, %134 : vector<8x128xf32>
    %137 = arith.mulf %132, %134 : vector<8x128xf32>
    %138 = arith.addf %135, %136 : vector<8x128xf32>
    %139 = arith.mulf %138, %138 : vector<8x128xf32>
    %140 = vector.broadcast %23 : f32 to vector<8x128xf32>
    %141 = arith.mulf %140, %138 : vector<8x128xf32>
    %142 = vector.broadcast %21 : f32 to vector<8x128xf32>
    %143 = arith.addf %141, %142 : vector<8x128xf32>
    %144 = arith.mulf %143, %138 : vector<8x128xf32>
    %145 = vector.broadcast %19 : f32 to vector<8x128xf32>
    %146 = arith.addf %144, %145 : vector<8x128xf32>
    %147 = arith.mulf %146, %138 : vector<8x128xf32>
    %cst_9 = arith.constant 1.000000e+00 : f32
    %148 = vector.broadcast %cst_9 : f32 to vector<8x128xf32>
    %149 = arith.addf %148, %147 : vector<8x128xf32>
    %150 = vector.broadcast %17 : f32 to vector<8x128xf32>
    %151 = arith.mulf %150, %138 : vector<8x128xf32>
    %152 = vector.broadcast %15 : f32 to vector<8x128xf32>
    %153 = arith.addf %151, %152 : vector<8x128xf32>
    %154 = arith.mulf %153, %138 : vector<8x128xf32>
    %155 = vector.broadcast %13 : f32 to vector<8x128xf32>
    %156 = arith.addf %154, %155 : vector<8x128xf32>
    %157 = arith.mulf %156, %138 : vector<8x128xf32>
    %cst_10 = arith.constant 1.000000e+00 : f32
    %158 = vector.broadcast %cst_10 : f32 to vector<8x128xf32>
    %159 = arith.addf %158, %157 : vector<8x128xf32>
    %160 = tpu.reciprocal %159 {approx = true} : vector<8x128xf32> -> vector<8x128xf32>
    %161 = arith.mulf %159, %160 : vector<8x128xf32>
    %cst_11 = arith.constant 2.000000e+00 : f32
    %162 = vector.broadcast %cst_11 : f32 to vector<8x128xf32>
    %163 = arith.subf %162, %161 : vector<8x128xf32>
    %164 = arith.mulf %160, %163 : vector<8x128xf32>
    %165 = arith.mulf %149, %164 : vector<8x128xf32>
    %166 = vector.broadcast %25 : f32 to vector<8x128xf32>
    %167 = arith.mulf %166, %137 : vector<8x128xf32>
    %168 = vector.broadcast %27 : f32 to vector<8x128xf32>
    %169 = arith.mulf %168, %135 : vector<8x128xf32>
    %170 = arith.addf %167, %169 : vector<8x128xf32>
    %171 = vector.broadcast %29 : f32 to vector<8x128xf32>
    %172 = arith.mulf %171, %138 : vector<8x128xf32>
    %173 = arith.addf %170, %172 : vector<8x128xf32>
    %174 = vector.broadcast %33 : f32 to vector<8x128xf32>
    %175 = arith.mulf %174, %139 : vector<8x128xf32>
    %176 = arith.addf %173, %175 : vector<8x128xf32>
    %177 = vector.broadcast %27 : f32 to vector<8x128xf32>
    %178 = arith.mulf %177, %137 : vector<8x128xf32>
    %179 = vector.broadcast %25 : f32 to vector<8x128xf32>
    %180 = arith.mulf %179, %136 : vector<8x128xf32>
    %181 = arith.addf %178, %180 : vector<8x128xf32>
    %182 = vector.broadcast %31 : f32 to vector<8x128xf32>
    %183 = arith.mulf %182, %138 : vector<8x128xf32>
    %184 = arith.addf %181, %183 : vector<8x128xf32>
    %185 = vector.broadcast %35 : f32 to vector<8x128xf32>
    %186 = arith.mulf %185, %139 : vector<8x128xf32>
    %187 = arith.addf %184, %186 : vector<8x128xf32>
    %188 = arith.subf %70, %176 : vector<8x128xf32>
    %189 = arith.mulf %188, %165 : vector<8x128xf32>
    %190 = arith.subf %77, %187 : vector<8x128xf32>
    %191 = arith.mulf %190, %165 : vector<8x128xf32>
    %192 = arith.mulf %189, %189 : vector<8x128xf32>
    %193 = arith.mulf %191, %191 : vector<8x128xf32>
    %194 = arith.mulf %189, %191 : vector<8x128xf32>
    %195 = arith.addf %192, %193 : vector<8x128xf32>
    %196 = arith.mulf %195, %195 : vector<8x128xf32>
    %197 = vector.broadcast %23 : f32 to vector<8x128xf32>
    %198 = arith.mulf %197, %195 : vector<8x128xf32>
    %199 = vector.broadcast %21 : f32 to vector<8x128xf32>
    %200 = arith.addf %198, %199 : vector<8x128xf32>
    %201 = arith.mulf %200, %195 : vector<8x128xf32>
    %202 = vector.broadcast %19 : f32 to vector<8x128xf32>
    %203 = arith.addf %201, %202 : vector<8x128xf32>
    %204 = arith.mulf %203, %195 : vector<8x128xf32>
    %cst_12 = arith.constant 1.000000e+00 : f32
    %205 = vector.broadcast %cst_12 : f32 to vector<8x128xf32>
    %206 = arith.addf %205, %204 : vector<8x128xf32>
    %207 = vector.broadcast %17 : f32 to vector<8x128xf32>
    %208 = arith.mulf %207, %195 : vector<8x128xf32>
    %209 = vector.broadcast %15 : f32 to vector<8x128xf32>
    %210 = arith.addf %208, %209 : vector<8x128xf32>
    %211 = arith.mulf %210, %195 : vector<8x128xf32>
    %212 = vector.broadcast %13 : f32 to vector<8x128xf32>
    %213 = arith.addf %211, %212 : vector<8x128xf32>
    %214 = arith.mulf %213, %195 : vector<8x128xf32>
    %cst_13 = arith.constant 1.000000e+00 : f32
    %215 = vector.broadcast %cst_13 : f32 to vector<8x128xf32>
    %216 = arith.addf %215, %214 : vector<8x128xf32>
    %217 = tpu.reciprocal %216 {approx = true} : vector<8x128xf32> -> vector<8x128xf32>
    %218 = arith.mulf %216, %217 : vector<8x128xf32>
    %cst_14 = arith.constant 2.000000e+00 : f32
    %219 = vector.broadcast %cst_14 : f32 to vector<8x128xf32>
    %220 = arith.subf %219, %218 : vector<8x128xf32>
    %221 = arith.mulf %217, %220 : vector<8x128xf32>
    %222 = arith.mulf %206, %221 : vector<8x128xf32>
    %223 = vector.broadcast %25 : f32 to vector<8x128xf32>
    %224 = arith.mulf %223, %194 : vector<8x128xf32>
    %225 = vector.broadcast %27 : f32 to vector<8x128xf32>
    %226 = arith.mulf %225, %192 : vector<8x128xf32>
    %227 = arith.addf %224, %226 : vector<8x128xf32>
    %228 = vector.broadcast %29 : f32 to vector<8x128xf32>
    %229 = arith.mulf %228, %195 : vector<8x128xf32>
    %230 = arith.addf %227, %229 : vector<8x128xf32>
    %231 = vector.broadcast %33 : f32 to vector<8x128xf32>
    %232 = arith.mulf %231, %196 : vector<8x128xf32>
    %233 = arith.addf %230, %232 : vector<8x128xf32>
    %234 = vector.broadcast %27 : f32 to vector<8x128xf32>
    %235 = arith.mulf %234, %194 : vector<8x128xf32>
    %236 = vector.broadcast %25 : f32 to vector<8x128xf32>
    %237 = arith.mulf %236, %193 : vector<8x128xf32>
    %238 = arith.addf %235, %237 : vector<8x128xf32>
    %239 = vector.broadcast %31 : f32 to vector<8x128xf32>
    %240 = arith.mulf %239, %195 : vector<8x128xf32>
    %241 = arith.addf %238, %240 : vector<8x128xf32>
    %242 = vector.broadcast %35 : f32 to vector<8x128xf32>
    %243 = arith.mulf %242, %196 : vector<8x128xf32>
    %244 = arith.addf %241, %243 : vector<8x128xf32>
    %245 = arith.subf %70, %233 : vector<8x128xf32>
    %246 = arith.mulf %245, %222 : vector<8x128xf32>
    %247 = arith.subf %77, %244 : vector<8x128xf32>
    %248 = arith.mulf %247, %222 : vector<8x128xf32>
    %249 = arith.mulf %246, %246 : vector<8x128xf32>
    %250 = arith.mulf %248, %248 : vector<8x128xf32>
    %251 = arith.mulf %246, %248 : vector<8x128xf32>
    %252 = arith.addf %249, %250 : vector<8x128xf32>
    %253 = arith.mulf %252, %252 : vector<8x128xf32>
    %254 = vector.broadcast %23 : f32 to vector<8x128xf32>
    %255 = arith.mulf %254, %252 : vector<8x128xf32>
    %256 = vector.broadcast %21 : f32 to vector<8x128xf32>
    %257 = arith.addf %255, %256 : vector<8x128xf32>
    %258 = arith.mulf %257, %252 : vector<8x128xf32>
    %259 = vector.broadcast %19 : f32 to vector<8x128xf32>
    %260 = arith.addf %258, %259 : vector<8x128xf32>
    %261 = arith.mulf %260, %252 : vector<8x128xf32>
    %cst_15 = arith.constant 1.000000e+00 : f32
    %262 = vector.broadcast %cst_15 : f32 to vector<8x128xf32>
    %263 = arith.addf %262, %261 : vector<8x128xf32>
    %264 = vector.broadcast %17 : f32 to vector<8x128xf32>
    %265 = arith.mulf %264, %252 : vector<8x128xf32>
    %266 = vector.broadcast %15 : f32 to vector<8x128xf32>
    %267 = arith.addf %265, %266 : vector<8x128xf32>
    %268 = arith.mulf %267, %252 : vector<8x128xf32>
    %269 = vector.broadcast %13 : f32 to vector<8x128xf32>
    %270 = arith.addf %268, %269 : vector<8x128xf32>
    %271 = arith.mulf %270, %252 : vector<8x128xf32>
    %cst_16 = arith.constant 1.000000e+00 : f32
    %272 = vector.broadcast %cst_16 : f32 to vector<8x128xf32>
    %273 = arith.addf %272, %271 : vector<8x128xf32>
    %274 = tpu.reciprocal %273 {approx = true} : vector<8x128xf32> -> vector<8x128xf32>
    %275 = arith.mulf %273, %274 : vector<8x128xf32>
    %cst_17 = arith.constant 2.000000e+00 : f32
    %276 = vector.broadcast %cst_17 : f32 to vector<8x128xf32>
    %277 = arith.subf %276, %275 : vector<8x128xf32>
    %278 = arith.mulf %274, %277 : vector<8x128xf32>
    %279 = arith.mulf %263, %278 : vector<8x128xf32>
    %280 = vector.broadcast %25 : f32 to vector<8x128xf32>
    %281 = arith.mulf %280, %251 : vector<8x128xf32>
    %282 = vector.broadcast %27 : f32 to vector<8x128xf32>
    %283 = arith.mulf %282, %249 : vector<8x128xf32>
    %284 = arith.addf %281, %283 : vector<8x128xf32>
    %285 = vector.broadcast %29 : f32 to vector<8x128xf32>
    %286 = arith.mulf %285, %252 : vector<8x128xf32>
    %287 = arith.addf %284, %286 : vector<8x128xf32>
    %288 = vector.broadcast %33 : f32 to vector<8x128xf32>
    %289 = arith.mulf %288, %253 : vector<8x128xf32>
    %290 = arith.addf %287, %289 : vector<8x128xf32>
    %291 = vector.broadcast %27 : f32 to vector<8x128xf32>
    %292 = arith.mulf %291, %251 : vector<8x128xf32>
    %293 = vector.broadcast %25 : f32 to vector<8x128xf32>
    %294 = arith.mulf %293, %250 : vector<8x128xf32>
    %295 = arith.addf %292, %294 : vector<8x128xf32>
    %296 = vector.broadcast %31 : f32 to vector<8x128xf32>
    %297 = arith.mulf %296, %252 : vector<8x128xf32>
    %298 = arith.addf %295, %297 : vector<8x128xf32>
    %299 = vector.broadcast %35 : f32 to vector<8x128xf32>
    %300 = arith.mulf %299, %253 : vector<8x128xf32>
    %301 = arith.addf %298, %300 : vector<8x128xf32>
    %302 = arith.subf %70, %290 : vector<8x128xf32>
    %303 = arith.mulf %302, %279 : vector<8x128xf32>
    %304 = arith.subf %77, %301 : vector<8x128xf32>
    %305 = arith.mulf %304, %279 : vector<8x128xf32>
    %306 = arith.mulf %303, %303 : vector<8x128xf32>
    %307 = arith.mulf %305, %305 : vector<8x128xf32>
    %308 = arith.mulf %303, %305 : vector<8x128xf32>
    %309 = arith.addf %306, %307 : vector<8x128xf32>
    %310 = arith.mulf %309, %309 : vector<8x128xf32>
    %311 = vector.broadcast %23 : f32 to vector<8x128xf32>
    %312 = arith.mulf %311, %309 : vector<8x128xf32>
    %313 = vector.broadcast %21 : f32 to vector<8x128xf32>
    %314 = arith.addf %312, %313 : vector<8x128xf32>
    %315 = arith.mulf %314, %309 : vector<8x128xf32>
    %316 = vector.broadcast %19 : f32 to vector<8x128xf32>
    %317 = arith.addf %315, %316 : vector<8x128xf32>
    %318 = arith.mulf %317, %309 : vector<8x128xf32>
    %cst_18 = arith.constant 1.000000e+00 : f32
    %319 = vector.broadcast %cst_18 : f32 to vector<8x128xf32>
    %320 = arith.addf %319, %318 : vector<8x128xf32>
    %321 = vector.broadcast %17 : f32 to vector<8x128xf32>
    %322 = arith.mulf %321, %309 : vector<8x128xf32>
    %323 = vector.broadcast %15 : f32 to vector<8x128xf32>
    %324 = arith.addf %322, %323 : vector<8x128xf32>
    %325 = arith.mulf %324, %309 : vector<8x128xf32>
    %326 = vector.broadcast %13 : f32 to vector<8x128xf32>
    %327 = arith.addf %325, %326 : vector<8x128xf32>
    %328 = arith.mulf %327, %309 : vector<8x128xf32>
    %cst_19 = arith.constant 1.000000e+00 : f32
    %329 = vector.broadcast %cst_19 : f32 to vector<8x128xf32>
    %330 = arith.addf %329, %328 : vector<8x128xf32>
    %331 = tpu.reciprocal %330 {approx = true} : vector<8x128xf32> -> vector<8x128xf32>
    %332 = arith.mulf %330, %331 : vector<8x128xf32>
    %cst_20 = arith.constant 2.000000e+00 : f32
    %333 = vector.broadcast %cst_20 : f32 to vector<8x128xf32>
    %334 = arith.subf %333, %332 : vector<8x128xf32>
    %335 = arith.mulf %331, %334 : vector<8x128xf32>
    %336 = arith.mulf %320, %335 : vector<8x128xf32>
    %337 = vector.broadcast %25 : f32 to vector<8x128xf32>
    %338 = arith.mulf %337, %308 : vector<8x128xf32>
    %339 = vector.broadcast %27 : f32 to vector<8x128xf32>
    %340 = arith.mulf %339, %306 : vector<8x128xf32>
    %341 = arith.addf %338, %340 : vector<8x128xf32>
    %342 = vector.broadcast %29 : f32 to vector<8x128xf32>
    %343 = arith.mulf %342, %309 : vector<8x128xf32>
    %344 = arith.addf %341, %343 : vector<8x128xf32>
    %345 = vector.broadcast %33 : f32 to vector<8x128xf32>
    %346 = arith.mulf %345, %310 : vector<8x128xf32>
    %347 = arith.addf %344, %346 : vector<8x128xf32>
    %348 = vector.broadcast %27 : f32 to vector<8x128xf32>
    %349 = arith.mulf %348, %308 : vector<8x128xf32>
    %350 = vector.broadcast %25 : f32 to vector<8x128xf32>
    %351 = arith.mulf %350, %307 : vector<8x128xf32>
    %352 = arith.addf %349, %351 : vector<8x128xf32>
    %353 = vector.broadcast %31 : f32 to vector<8x128xf32>
    %354 = arith.mulf %353, %309 : vector<8x128xf32>
    %355 = arith.addf %352, %354 : vector<8x128xf32>
    %356 = vector.broadcast %35 : f32 to vector<8x128xf32>
    %357 = arith.mulf %356, %310 : vector<8x128xf32>
    %358 = arith.addf %355, %357 : vector<8x128xf32>
    %359 = arith.subf %70, %347 : vector<8x128xf32>
    %360 = arith.mulf %359, %336 : vector<8x128xf32>
    %361 = arith.subf %77, %358 : vector<8x128xf32>
    %362 = arith.mulf %361, %336 : vector<8x128xf32>
    %363 = arith.mulf %360, %63 : vector<8x128xf32>
    %364 = arith.mulf %362, %63 : vector<8x128xf32>
    %365 = vector.broadcast %37 : f32 to vector<8x128xf32>
    %366 = arith.mulf %365, %363 : vector<8x128xf32>
    %367 = vector.broadcast %39 : f32 to vector<8x128xf32>
    %368 = arith.mulf %367, %364 : vector<8x128xf32>
    %369 = arith.addf %366, %368 : vector<8x128xf32>
    %370 = vector.broadcast %41 : f32 to vector<8x128xf32>
    %371 = arith.mulf %370, %63 : vector<8x128xf32>
    %372 = arith.addf %369, %371 : vector<8x128xf32>
    %373 = vector.broadcast %43 : f32 to vector<8x128xf32>
    %374 = arith.addf %372, %373 : vector<8x128xf32>
    %c0_21 = arith.constant 0 : index
    %c0_22 = arith.constant 0 : index
    %c0_23 = arith.constant 0 : index
    %c0_24 = arith.constant 0 : index
    %375 = vector.load %arg6[%c0_21, %c0_22, %c0_23, %c0_24] : memref<1x3x8x128xf32, #tpu.memory_space<vmem>>, vector<1x1x8x128xf32>
    %376 = vector.shape_cast %375 : vector<1x1x8x128xf32> to vector<8x128xf32>
    %377 = vector.shape_cast %374 : vector<8x128xf32> to vector<1x1x8x128xf32>
    tpu.vector_store %arg6[%c0_21, %c0_22, %c0_23, %c0_24], %377 {strides = array<i32>} : memref<1x3x8x128xf32, #tpu.memory_space<vmem>>, vector<1x1x8x128xf32>,
    %378 = vector.broadcast %45 : f32 to vector<8x128xf32>
    %379 = arith.mulf %378, %363 : vector<8x128xf32>
    %380 = vector.broadcast %47 : f32 to vector<8x128xf32>
    %381 = arith.mulf %380, %364 : vector<8x128xf32>
    %382 = arith.addf %379, %381 : vector<8x128xf32>
    %383 = vector.broadcast %49 : f32 to vector<8x128xf32>
    %384 = arith.mulf %383, %63 : vector<8x128xf32>
    %385 = arith.addf %382, %384 : vector<8x128xf32>
    %386 = vector.broadcast %51 : f32 to vector<8x128xf32>
    %387 = arith.addf %385, %386 : vector<8x128xf32>
    %c0_25 = arith.constant 0 : index
    %c1_26 = arith.constant 1 : index
    %c0_27 = arith.constant 0 : index
    %c0_28 = arith.constant 0 : index
    %388 = vector.load %arg6[%c0_25, %c1_26, %c0_27, %c0_28] : memref<1x3x8x128xf32, #tpu.memory_space<vmem>>, vector<1x1x8x128xf32>
    %389 = vector.shape_cast %388 : vector<1x1x8x128xf32> to vector<8x128xf32>
    %390 = vector.shape_cast %387 : vector<8x128xf32> to vector<1x1x8x128xf32>
    tpu.vector_store %arg6[%c0_25, %c1_26, %c0_27, %c0_28], %390 {strides = array<i32>} : memref<1x3x8x128xf32, #tpu.memory_space<vmem>>, vector<1x1x8x128xf32>,
    %391 = vector.broadcast %53 : f32 to vector<8x128xf32>
    %392 = arith.mulf %391, %363 : vector<8x128xf32>
    %393 = vector.broadcast %55 : f32 to vector<8x128xf32>
    %394 = arith.mulf %393, %364 : vector<8x128xf32>
    %395 = arith.addf %392, %394 : vector<8x128xf32>
    %396 = vector.broadcast %57 : f32 to vector<8x128xf32>
    %397 = arith.mulf %396, %63 : vector<8x128xf32>
    %398 = arith.addf %395, %397 : vector<8x128xf32>
    %399 = vector.broadcast %59 : f32 to vector<8x128xf32>
    %400 = arith.addf %398, %399 : vector<8x128xf32>
    %c0_29 = arith.constant 0 : index
    %c2_30 = arith.constant 2 : index
    %c0_31 = arith.constant 0 : index
    %c0_32 = arith.constant 0 : index
    %401 = vector.load %arg6[%c0_29, %c2_30, %c0_31, %c0_32] : memref<1x3x8x128xf32, #tpu.memory_space<vmem>>, vector<1x1x8x128xf32>
    %402 = vector.shape_cast %401 : vector<1x1x8x128xf32> to vector<8x128xf32>
    %403 = vector.shape_cast %400 : vector<8x128xf32> to vector<1x1x8x128xf32>
    tpu.vector_store %arg6[%c0_29, %c2_30, %c0_31, %c0_32], %403 {strides = array<i32>} : memref<1x3x8x128xf32, #tpu.memory_space<vmem>>, vector<1x1x8x128xf32>,
    return
  }
  func.func @transform_0(%arg0: i32, %arg1: i32) -> (i32, i32) {
    %c0_i32 = arith.constant 0 : i32
    %c0_i32_0 = arith.constant 0 : i32
    %c0_i32_1 = arith.constant 0 : i32
    return %c0_i32, %c0_i32_0 : i32, i32
  }
  func.func @transform_1(%arg0: i32, %arg1: i32) -> (i32, i32) {
    %c0_i32 = arith.constant 0 : i32
    %c0_i32_0 = arith.constant 0 : i32
    return %arg0, %c0_i32 : i32, i32
  }
  func.func @transform_2(%arg0: i32, %arg1: i32) -> (i32, i32) {
    %c0_i32 = arith.constant 0 : i32
    %c0_i32_0 = arith.constant 0 : i32
    return %arg0, %c0_i32 : i32, i32
  }
  func.func @transform_3(%arg0: i32, %arg1: i32) -> (i32, i32, i32) {
    %c0_i32 = arith.constant 0 : i32
    %c0_i32_0 = arith.constant 0 : i32
    return %arg1, %arg0, %c0_i32 : i32, i32, i32
  }
  func.func @transform_4(%arg0: i32, %arg1: i32) -> (i32, i32, i32, i32) {
    %c0_i32 = arith.constant 0 : i32
    %c0_i32_0 = arith.constant 0 : i32
    %c0_i32_1 = arith.constant 0 : i32
    return %arg1, %c0_i32, %arg0, %c0_i32_0 : i32, i32, i32, i32
  }
}

</mosaic_0001>

<bundles_post_ra>
// kernel: squeeze.7
= control target key start
LH: loop header
LB: loop body
LE: loop exit
PB: predicated region body
PF: predicated region fallthrough
CT: control target
= control target key end

     0   :  { %2 = vsyncpa [#allocation1], 0  ;;  %s161_s6 = smov [#allocation0]   ;;  %s197_s0 = inlined_call_operand.hbm [shape: f32[2,1,16,16], index: 0, kind: input, shape index: {}]   ;;  %s198_s1 = inlined_call_operand.vmem [shape: f32[2,256], index: 1, kind: output, shape index: {}]  }
   0x1   :  { %s7_s7 = sshll.u32 %s161_s6, 4  ;;  %s8_s7 = int_to_ptr.vmem [resolvable:$true] %s7_s7 }
   0x2   :  { %s147_s8 = scalar_lea.vmem %s8_s7, 512  ;;  %p152_p1 = scmp.lt.s32.totalorder %s8_s7, %s8_s7 }
   0x3   :  { %p148_p0 = scmp.ne.s32.totalorder %s8_s7, %s147_s8  ;;  %p153_p2 = scmp.lt.s32.totalorder %s147_s8, %s147_s8 }
   0x5   :  { %p154_p3 = por %p153_p2, %p152_p1 }
   0x7   :  { %p155_p4 = pnand %p154_p3, %p148_p0 }
   0x9   :  { %158 = shalt.err (!%p155_p4)
}
   0xa   :  { %10 = dma.hbm_to_vmem [thread:$0]  %s197_s0, 512, %s8_s7, [#allocation1]  }
   0xb   :  { %159 = dma.done.wait [#allocation1], 512  }
   0xc   :  { %160 = vsyncadd [#allocation1], 4294966784  ;;  %s18_s0 = smov 3  ;;  %s21_s11 = smov 12  ;;  %vm23_vm0 = vcmask 1043458   ;;  %vm13_vm1 = vcmask 130048  }
   0xd   :  { %s46_s12 = smov 3  ;;  %s49_s13 = smov 12  ;;  %v19_v0 = vld [vmem:[#allocation0 + $0x7] ss:$16 sm:%s18_s0]   ;;  %v22_v1 = vld [vmem:[#allocation0 - $0x11] ss:$16 sm:%s21_s11]  }
   0xe   :  { %s32_s14 = smov 3  ;;  %s35_s15 = smov 12  ;;  %v47_v2 = vld [vmem:[#allocation0 + $0x5] ss:$16 sm:%s46_s12]   ;;  %v24_v3 = vsel %vm23_vm0, %v22_v1, %v19_v0  ;;  %v50_v4 = vld [vmem:[#allocation0 - $0x13] ss:$16 sm:%s49_s13]  }
   0xf   :  { %s60_s16 = smov 3  ;;  %s63_s17 = smov 12  ;;  %v33_v5 = vld [vmem:[#allocation0 + $0x6] ss:$16 sm:%s32_s14]   ;;  %v36_v6 = vld [vmem:[#allocation0 - $0x12] ss:$16 sm:%s35_s15]   ;;  %v52_v7 = vsel %vm23_vm0, %v50_v4, %v47_v2 }
  0x10   :  { %s74_s18 = smov 3  ;;  %s77_s19 = smov 12  ;;  %v61_v8 = vld [vmem:[#allocation0 + $0x4] ss:$16 sm:%s60_s16]   ;;  %v64_v9 = vld [vmem:[#allocation0 - $0x14] ss:$16 sm:%s63_s17]   ;;  %v38_v10 = vsel %vm23_vm0, %v36_v6, %v33_v5 }
  0x11   :  { %s162_s20 = smov 112   ;;  %s163_s21 = smov 80   ;;  %v66_v11 = vsel %vm23_vm0, %v64_v9, %v61_v8  ;;  %v75_v12 = vld [vmem:[#allocation0 + $0x3] ss:$16 sm:%s74_s18]   ;;  %v78_v13 = vld [vmem:[#allocation0 - $0x15] ss:$16 sm:%s77_s19]  }
  0x12   :  { %25 = vrot.lane.b32.xlu0 %v24_v3, %s162_s20  ;;  %53 = vrot.lane.b32.xlu1 %v52_v7, %s163_s21  ;;  %s88_s22 = smov 3  ;;  %s91_s23 = smov 12  ;;  %v80_v16 = vsel %vm23_vm0, %v78_v13, %v75_v12  ;;  %v12_v17 = vld [vmem:[#allocation0] ss:$8 sm:$0xf]   ;;  %vm27_vm2 = vcmask 1048448  }
  0x13   :  { %v89_v14 = vld [vmem:[#allocation0 + $0x2] ss:$16 sm:%s88_s22]   ;;  %v92_v15 = vld [vmem:[#allocation0 - $0x16] ss:$16 sm:%s91_s23]   ;;  %s102_s24 = smov 3  ;;  %s105_s25 = smov 12 }
  0x14   :  { %s164_s26 = smov 96   ;;  %s165_s27 = smov 64   ;;  %v94_v18 = vsel %vm23_vm0, %v92_v15, %v89_v14  ;;  %v103_v19 = vld [vmem:[#allocation0 + $0x1] ss:$16 sm:%s102_s24]   ;;  %v106_v20 = vld [vmem:[#allocation0 - $0x17] ss:$16 sm:%s105_s25]  }
  0x15   :  { %14 = vst.msk [vmem:[#allocation2] ss:$8 sm:$0x3] %vm13_vm1, %v12_v17   ;;  %16 = vst.msk [vmem:[#allocation2 - $0xf] ss:$8 sm:$0xc] %vm13_vm1, %v12_v17   ;;  %v108_v21 = vsel %vm23_vm0, %v106_v20, %v103_v19 }
  0x16   :  { %39 = vrot.lane.b32.xlu0 %v38_v10, %s164_s26  ;;  %67 = vrot.lane.b32.xlu1 %v66_v11, %s165_s27  ;;  %s166_s28 = smov 48   ;;  %s167_s29 = smov 32   ;;  %vm41_vm3 = vcmask 917248   ;;  %vm55_vm4 = vcmask 786048   ;;  %vm69_vm5 = vcmask 654848   ;;  %vm83_vm6 = vcmask 523648  }
  0x17   :  { %s168_s30 = smov 16   ;;  %vm97_vm7 = vcmask 392448   ;;  %vm111_vm8 = vcmask 261248  }
  0x1a   :  { %81 = vrot.lane.b32.xlu0 %v80_v16, %s166_s28  ;;  %95 = vrot.lane.b32.xlu1 %v94_v18, %s167_s29 }
  0x1e   :  { %109 = vrot.lane.b32.xlu0 %v108_v21, %s168_s30 }
  0x84   :  { %v26_v22 = vpop.permute.xlu0 %25   ;;  %v54_v23 = vpop.permute.xlu1 %53  }
  0x85   :  { %28 = vst.msk [vmem:[#allocation2] sm:$0x3] %vm27_vm2, %v26_v22   ;;  %30 = vst.msk [vmem:[#allocation2 + $0x6] sm:$0xc] %vm27_vm2, %v26_v22  }
  0x88   :  { %v40_v24 = vpop.permute.xlu0 %39   ;;  %v68_v25 = vpop.permute.xlu1 %67  }
  0x89   :  { %42 = vst.msk [vmem:[#allocation2] sm:$0x3] %vm41_vm3, %v40_v24   ;;  %44 = vst.msk [vmem:[#allocation2 + $0x6] sm:$0xc] %vm41_vm3, %v40_v24  }
  0x8a   :  { %56 = vst.msk [vmem:[#allocation2] sm:$0x3] %vm55_vm4, %v54_v23   ;;  %58 = vst.msk [vmem:[#allocation2 + $0x6] sm:$0xc] %vm55_vm4, %v54_v23  }
  0x8b   :  { %70 = vst.msk [vmem:[#allocation2] sm:$0x3] %vm69_vm5, %v68_v25   ;;  %72 = vst.msk [vmem:[#allocation2 + $0x6] sm:$0xc] %vm69_vm5, %v68_v25  }
  0x8c   :  { %v82_v26 = vpop.permute.xlu0 %81   ;;  %v96_v27 = vpop.permute.xlu1 %95  }
  0x8d   :  { %84 = vst.msk [vmem:[#allocation2] sm:$0x3] %vm83_vm6, %v82_v26   ;;  %86 = vst.msk [vmem:[#allocation2 + $0x6] sm:$0xc] %vm83_vm6, %v82_v26  }
  0x8e   :  { %98 = vst.msk [vmem:[#allocation2] sm:$0x3] %vm97_vm7, %v96_v27   ;;  %100 = vst.msk [vmem:[#allocation2 + $0x6] sm:$0xc] %vm97_vm7, %v96_v27  }
  0x90   :  { %v110_v28 = vpop.permute.xlu0 %109  }
  0x91   :  { %112 = vst.msk [vmem:[#allocation2] sm:$0x3] %vm111_vm8, %v110_v28   ;;  %114 = vst.msk [vmem:[#allocation2 + $0x6] sm:$0xc] %vm111_vm8, %v110_v28  }
  0x98   :  { %v119_v29 = vld [vmem:[#allocation2] sm:$0x3]  ;;  %v124_v30 = vld [vmem:[#allocation2 + $0x8] sm:$0x3] }
  0x99   :  { %122 = vst [vmem:[%s198_s1] sm:$0x3] %v119_v29  ;;  %130 = vst [vmem:[%s198_s1 + $0x2] sm:$0x3] %v124_v30 }
  0x9a   :  { %129 = vsyncpa [#allocation1], 1 }

// kernel: custom-call.22
= control target key start
LH: loop header
LB: loop body
LE: loop exit
PB: predicated region body
PF: predicated region fallthrough
CT: control target
= control target key end

     0   :  { %5 = vsyncpa [#allocation6], 0  ;;  %s909_s0 = inlined_call_operand.vmem [shape: f32[2,3,3], index: 0, kind: input, shape index: {}]   ;;  %s910_s1 = inlined_call_operand.vmem [shape: f32[2,3,3], index: 1, kind: output, shape index: {0}]   ;;  %s911_s2 = inlined_call_operand.hbm [shape: s32[2,3], index: 2, kind: output, shape index: {1}]   ;;  %s912_s3 = inlined_call_operand.vmem [shape: s32[2,3], index: 3, kind: output, shape index: {2}]  }
   0x1   :  { %7 = vsyncpa [#allocation6 + $0x1], 0  ;;  %s726_s12 = smov 0   ;;  %s728_s13 = smov 0  }
   0x2   :  { %s730_s14 = smov 0   ;;  %s732_s15 = smov 0  }
   0x3 LB: > { %s747_s16 = sadd.s32 4294967295, %s698_s15   ;;  %s563_s17 = sadd.s32 4294967294, %s698_s15   ;;  %s698_s15 = sphi %s732_s15, %s920_s15   ;;  %s694_s14 = sphi %s730_s14, %s919_s14   ;;  %s690_s13 = sphi %s728_s13, %s918_s13   ;;  %s686_s12 = sphi %s726_s12, %s917_s12  }
   0x4   : > { %s751_s18 = sadd.s32 1, %s698_s15   ;;  %s17_s19 = sshrl.u32 %s698_s15, 3 }
   0x5   : > { %s18_s20 = sshrl.u32 %s751_s18, 3  ;;  %s22_s21 = sadd.s32 1, %s694_s14 }
   0x6   : > { %s19_s22 = ssub.s32 %s17_s19, %s18_s20  ;;  %p32_p0 = scmp.ne.s32.totalorder %s694_s14, %s690_s13 }
   0x7   : > { %p20_p1 = scmp.eq.s32.totalorder %s19_s22, 0  ;;  %p33_p2 = scmp.eq.s32.totalorder %s747_s16, 1 }
   0x8   : > { %p38_p3 = scmp.ne.s32.totalorder %s690_s13, %s686_s12  ;;  %p39_p4 = scmp.eq.s32.totalorder %s563_s17, 1 }
   0x9   : > { %s762_s23 = scalar_select %p20_p1, %s694_s14, %s22_s21  }
   0xa   : > { %p764_p5 = por %p33_p2, %p32_p0  ;;  %p768_p6 = por %p39_p4, %p38_p3 }
   0xb   : > { %p565_p7 = scmp.ge.s32.totalorder %s698_s15, 2 }
   0xc   : > { %s85_s26 = sand.u32 (!%p565_p7), 1, %s698_s15   ;;  %s567_s27 = sshll.u32 (!%p565_p7), %s698_s15, 2 }
   0xd   : > { %83 = sbr.rel (%p565_p7) target bundleno = 20 (0x14), region = 16  ;;  %s566_s28 = sshll.u32 (!%p565_p7), %s85_s26, 2 }
   0xe   : > { %s89_s4 = scalar_lea.vmem (!%p565_p7), %s909_s0, %s567_s27  ;;  %s87_s5 = scalar_lea.vmem (!%p565_p7), [#allocation1], %s566_s28 }
  0x12   : > { %v106_v0 = vld [vmem:[%s89_s4] sm:$0xf] }
  0x13   : > { %107 = vst [vmem:[%s87_s5] sm:$0xf] %v106_v0 }
  0x14 PF: > { %p568_p8 = scmp.ge.s32.totalorder %s698_s15, 1  ;;  %p124_p9 = scmp.lt.s32.totalorder %s698_s15, 3 }
  0x16   : > { %p125_p10 = pnand %p568_p8, %p124_p9 }
  0x18   : > { %128 = sbr.rel (%p125_p10) target bundleno = 446 (0x1be), region = 50 }
  0x1d   : > { %s135_s6 = sand.u32 1, %s747_s16   ;;  %s146_s7 = sand.u32 1, %s690_s13   ;;  %v169_v1 = vlaneseq  ;;  %v704_v4 = vmov 0  }
  0x1e   : > { %s784_s8 = sshll.u32 %s135_s6, 2  ;;  %s788_s9 = sshll.u32 %s146_s7, 1 }
  0x1f   : > { %v791_v2 = vshrl.u32 %v169_v1, 7  ;;  %s137_s10 = scalar_lea.vmem [#allocation1], %s784_s8  ;;  %s164_s11 = sand.u32 7, %s747_s16  }
  0x20   : > { %v158_v3 = vld [vmem:[%s137_s10] sm:$0xf]  ;;  %s796_s17 = scalar_lea.vmem [#allocation4], %s164_s11  ;;  %s141_s19 = scalar_lea.vmem [#allocation3], %s784_s8 }
  0x21   : > { %159 = vst [vmem:[#allocation0] sm:$0xf] %v158_v3  ;;  %173 = vst [vmem:[#allocation9] sm:$0xff] %v791_v2  ;;  %s148_s20 = scalar_lea.vmem [#allocation5], %s788_s9  ;;  %s154_s21 = scalar_lea.vmem [#allocation8], %s788_s9 }
  0x22   : > { %168 = vst [vmem:[%s796_s17] sm:$0x1] %v704_v4  ;;  %s802_s22 = scalar_lea.vmem [#allocation7], %s164_s11  ;;  %s804_s26 = smov 0  }
  0x28   : > { %v162_v5 = vld [vmem:[#allocation0] sm:$0xff] }
  0x29   : > { %163 = vst [vmem:[#allocation2] sm:$0xff] %v162_v5 }
  0x2a LB: >> { %vm189_vm0 = vcmp.lt.s32.totalorder %v791_v2, 3  ;;  %v811_v8 = vstv %s702_s26  ;;  %s230_s27 = ssub.s32 128, %s702_s26  ;;  %v236_v38 = vand.u32 127, %v169_v1  ;;  %v239_v40 = vld [vmem:[%s796_s17] ss:$0 sm:$0xff]  ;;  %s242_s28 = scalar_lea.vmem [#allocation2], %s702_s26  ;;  %s702_s26 = sphi %s804_s26, %s179_s26  }
  0x2b   : >> { %vm188_vm1 = vcmp.ge.s32.totalorder %v791_v2, %v811_v8  ;;  %s248_s30 = scalar_lea.vmem [#allocation9], %s702_s26  ;;  %vm268_vm15 = vcmp.gt.s32.totalorder %v791_v2, %v811_v8  ;;  %s179_s26 = sadd.s32 1, %s702_s26  }
  0x2c   : >> { %vm190_vm3 = vmand %vm188_vm1, %vm189_vm0  ;;  %vm260_vm12 = vcmp.gt.s32.totalorder %v236_v38, %v811_v8  ;;  %vm237_vm13 = vcmp.eq.s32.totalorder %v236_v38, %v811_v8  ;;  %v250_v42 = vld [vmem:[%s248_s30] ss:$0 sm:$0xff]  ;;  %p176_p11 = scmp.ge.s32.totalorder %s179_s26, 3  }
  0x2d   : >> { %vm272_vm1 = vmand %vm268_vm15, %vm237_vm13  ;;  %s913_s6 = sshrl.u32 (%p176_p11), %s747_s16, 3  ;;  %s577_s10 = sshll.u32 (%p176_p11), %s747_s16, 2 }
  0x2e   : > { %s578_s11 = sshll.u32 (%p176_p11), %s913_s6, 5 }
  0x30   : >> { %v184_v6 = vld [vmem:[#allocation2] sm:$0xff]  ;;  %v244_v41 = vld [vmem:[%s242_s28] ss:$0 sm:$0xff] }
  0x31   : >> { %v185_v7 = vand.u32 2147483647, %v184_v6 }
  0x33   : >> { %vm573_vm2 = vcmp.gt.f32.partialorder %v185_v7, -inf }
  0x34   : >> { %vm192_vm4 = vmand %vm190_vm3, %vm573_vm2 }
  0x35   : >> { %v193_v9 = vsel %vm192_vm4, %v791_v2, %v811_v8  ;;  %v194_v10 = vsel %vm192_vm4, %v185_v7, -inf }
  0x36   : >> { %v195_v11 = vrot.slane %v194_v10, 1  ;;  %v196_v12 = vrot.slane %v193_v9, 1 }
  0x38   : >> { %vm197_vm5 = vcmp.ge.f32.partialorder %v195_v11, %v194_v10  ;;  %v200_v13 = vrot.slane %v195_v11, 1  ;;  %v201_v14 = vrot.slane %v196_v12, 1 }
  0x39   : >> { %v198_v15 = vsel %vm197_vm5, %v195_v11, %v194_v10  ;;  %v199_v16 = vsel %vm197_vm5, %v196_v12, %v193_v9 }
  0x3a   : >> { %vm202_vm6 = vcmp.ge.f32.partialorder %v200_v13, %v198_v15  ;;  %v205_v17 = vrot.slane %v200_v13, 1  ;;  %v206_v18 = vrot.slane %v201_v14, 1 }
  0x3b   : >> { %v203_v19 = vsel %vm202_vm6, %v200_v13, %v198_v15  ;;  %v204_v20 = vsel %vm202_vm6, %v201_v14, %v199_v16 }
  0x3c   : >> { %vm207_vm7 = vcmp.ge.f32.partialorder %v205_v17, %v203_v19  ;;  %v210_v21 = vrot.slane %v205_v17, 1  ;;  %v211_v22 = vrot.slane %v206_v18, 1 }
  0x3d   : >> { %v208_v23 = vsel %vm207_vm7, %v205_v17, %v203_v19  ;;  %v209_v24 = vsel %vm207_vm7, %v206_v18, %v204_v20 }
  0x3e   : >> { %vm212_vm8 = vcmp.ge.f32.partialorder %v210_v21, %v208_v23  ;;  %v215_v25 = vrot.slane %v210_v21, 1  ;;  %v216_v26 = vrot.slane %v211_v22, 1 }
  0x3f   : >> { %v213_v27 = vsel %vm212_vm8, %v210_v21, %v208_v23  ;;  %v214_v28 = vsel %vm212_vm8, %v211_v22, %v209_v24 }
  0x40   : >> { %vm217_vm9 = vcmp.ge.f32.partialorder %v215_v25, %v213_v27  ;;  %v220_v29 = vrot.slane %v215_v25, 1  ;;  %v221_v30 = vrot.slane %v216_v26, 1 }
  0x41   : >> { %v218_v31 = vsel %vm217_vm9, %v215_v25, %v213_v27  ;;  %v219_v32 = vsel %vm217_vm9, %v216_v26, %v214_v28 }
  0x42   : >> { %vm222_vm10 = vcmp.ge.f32.partialorder %v220_v29, %v218_v31  ;;  %v225_v33 = vrot.slane %v220_v29, 1  ;;  %v226_v34 = vrot.slane %v221_v30, 1 }
  0x43   : >> { %v223_v35 = vsel %vm222_vm10, %v220_v29, %v218_v31  ;;  %v224_v36 = vsel %vm222_vm10, %v221_v30, %v219_v32 }
  0x44   : >> { %vm227_vm11 = vcmp.ge.f32.partialorder %v225_v33, %v223_v35 }
  0x45   : >> { %v229_v37 = vsel %vm227_vm11, %v226_v34, %v224_v36 }
  0x46   : >> { %231 = vrot.lane.b32.xlu0 %v229_v37, %s230_s27  ;;  %s849_s27 = scalar_lea.vmem (%p176_p11), %s910_s1, %s577_s10 }
  0xb8   : >> { %v232_v39 = vpop.permute.xlu0 %231 }
  0xb9   : >> { %582 = vpush %v232_v39 }
  0xea   : >> { %s583_s29 = spop %582 }
  0xeb   : >> { %v238_v43 = vstv %s583_s29  ;;  %s243_s4 = scalar_lea.vmem [#allocation2], %s583_s29  ;;  %s249_s5 = scalar_lea.vmem [#allocation9], %s583_s29 }
  0xec   : >> { %v245_v44 = vld [vmem:[%s243_s4] ss:$0 sm:$0xff]  ;;  %v240_v46 = vsel %vm237_vm13, %v238_v43, %v239_v40 }
  0xed   : >> { %v251_v45 = vld [vmem:[%s249_s5] ss:$0 sm:$0xff]  ;;  %246 = vst [vmem:[%s243_s4] sm:$0x1] %v244_v41  ;;  %vm254_vm14 = vcmp.ne.f32.partialorder %v245_v44, 0.0  ;;  %241 = vst [vmem:[%s796_s17] sm:$0x1] %v240_v46  ;;  %v261_v53 = vsel %vm260_vm12, %v245_v44, 0.0 }
  0xee   : >> { %252 = vst [vmem:[%s249_s5] sm:$0x1] %v250_v42  ;;  %247 = vst [vmem:[%s242_s28] sm:$0x1] %v245_v44  ;;  %s410_s4 = sshll.u32 (%p176_p11), %s148_s20, 4  ;;  %s357_s5 = scalar_lea.sflag (%p176_p11), [#allocation6], %s146_s7  ;;  %s411_s4 = int_to_ptr.vmem [resolvable:$true] %s410_s4 }
  0xef   : >> { %253 = vst [vmem:[%s248_s30] sm:$0x1] %v251_v45  ;;  %vm255_vm0 = vmand %vm237_vm13, %vm254_vm14  ;;  %s854_s30 = scalar_lea.hbm (%p176_p11), %s911_s2, %s578_s11  ;;  %s634_s6 = scalar_lea.vmem (%p176_p11), %s411_s4, 32 }
  0xf0   : >> { %v256_v47 = vsel %vm255_vm0, %v245_v44, 1.0  ;;  %p635_p12 = scmp.ne.s32.totalorder (%p176_p11), %s411_s4, %s634_s6  ;;  %s705_s17 = smov (%p176_p11), [#allocation5]  }
  0xf1   : >> { %v269_v48 = vsel %vm268_vm15, %v256_v47, 1.0  ;;  %s638_s10 = sshll.u32 (%p176_p11), %s705_s17, 4  ;;  %s639_s10 = int_to_ptr.vmem [resolvable:$false] %s638_s10 }
  0xf2   : >> { %632 = vrcp.f32 %v269_v48  ;;  %p636_p13 = pnand (%p176_p11), %p635_p12, %p764_p5  ;;  %s640_s26 = scalar_lea.vmem (%p176_p11), %s639_s10, 64 }
  0xf3   : > { %p641_p1 = scmp.lt.s32.totalorder (%p176_p11), %s411_s4, %s639_s10  ;;  %p642_p2 = scmp.lt.s32.totalorder (%p176_p11), %s640_s26, %s634_s6 }
  0xf4   : > { %v340_v59 = vld [vmem:[#allocation4] sm:$0x3] (%p176_p11)  ;;  %p637_p0 = pneg (%p176_p11), %p636_p13 }
  0xf5   : >> { %v265_v50 = vld [vmem:[#allocation2] sm:$0xff]  ;;  %343 = vst [vmem:[%s148_s20] sm:$0x3] (%p176_p11), %v340_v59  ;;  %p643_p3 = por (%p176_p11), %p642_p2, %p641_p1 }
  0xf6   : > { %v279_v57 = vld [vmem:[#allocation9] sm:$0xff] (%p176_p11) }
  0xf7   : > { %p644_p4 = pnand (%p176_p11), %p643_p3, %p637_p0 }
  0xff   : >> { %v633_v49 = vpop.eup %632 }
 0x100   : >> { %v271_v51 = vmul.f32 %v633_v49, %v265_v50 }
 0x102   : >> { %v273_v52 = vsel %vm272_vm1, %v271_v51, 0.0 }
 0x103   : >> { %274 = vadd.xlane.f32.xlu0 %v273_v52 }
 0x130   : > { %295 = vxpose.xlu0.b32.start.end [1/1] (short) (narrow) (%p176_p11), %v279_v57, 8 }
 0x18c   : >> { %v275_v54 = vpop.xlane.xlu0 %274 }
 0x18d   : >> { %v276_v55 = vmul.f32 %v275_v54, %v261_v53  ;;  %178 = sbr.rel (!%p176_p11) target bundleno = 42 (0x2a), region = 202 }
 0x18f   : >> { %v277_v56 = vsub.f32 %v271_v51, %v276_v55 }
 0x191   : >> { %278 = vst [vmem:[#allocation2] sm:$0xff] %v277_v56 }
 0x198   : > { %v332_v58 = vld [vmem:[#allocation2] sm:$0xf] }
 0x199   : > { %335 = vst [vmem:[%s141_s19] sm:$0xf] %v332_v58 }
 0x1a0   : > { %v383_v60 = vld [vmem:[%s141_s19] sm:$0xf] }
 0x1a1   : > { %647 = shalt.err (!%p644_p4)
}
 0x1a2   : > { %s648_s8 = scalar_lea.hbm %s854_s30, 32  ;;  %s652_s20 = scalar_lea.hbm %s911_s2, 32 }
 0x1a3   : > { %p649_p8 = scmp.ne.s32.totalorder %s854_s30, %s648_s8  ;;  %p653_p11 = scmp.lt.s32.totalorder %s854_s30, %s911_s2 }
 0x1a4   : > { %p654_p12 = scmp.lt.s32.totalorder %s652_s20, %s648_s8 }
 0x1a5   : > { %p650_p9 = pnand %p649_p8, %p764_p5 }
 0x1a6   : > { %p655_p13 = por %p654_p12, %p653_p11 }
 0x1a7   : > { %p651_p10 = pneg %p650_p9 }
 0x1a9   : > { %p656_p0 = pnand %p655_p13, %p651_p10 }
 0x1ab   : > { %659 = shalt.err (!%p656_p0)
}
 0x1ac   : > { %584 = dma.vmem_to_hbm [thread:$0]  (%p764_p5), %s411_s4, 32, %s854_s30, %s357_s5   ;;  %384 = vst [vmem:[%s849_s27] sm:$0xf] %v383_v60  ;;  %v311_v61 = vpop.trf.xlu0 }
 0x1ad   : > { %327 = vst [vmem:[%s802_s22] sm:$0x1] %v311_v61  ;;  %s916_s6 = sshrl.u32 (%p764_p5), %s747_s16, 3 }
 0x1ae   : > { %s579_s29 = sshll.u32 (%p764_p5), %s916_s6, 1 }
 0x1af   : > { %s419_s26 = scalar_lea.vmem (%p764_p5), %s912_s3, %s579_s29 }
 0x1b1   : > { %416 = sbr.rel (!%p764_p5) target bundleno = 446 (0x1be), region = 96 }
 0x1b4   : > { %v348_v62 = vld [vmem:[#allocation7] sm:$0x3] }
 0x1b5   : > { %351 = vst [vmem:[%s154_s21] sm:$0x3] %v348_v62 }
 0x1bc   : > { %v436_v63 = vld [vmem:[%s154_s21] sm:$0x3] }
 0x1bd   : > { %437 = vst [vmem:[%s419_s26] sm:$0x3] %v436_v63 }
 0x1be PF: > { %s465_s22 = sand.u32 1, %s686_s12   ;;  %p587_p5 = pnand %p565_p7, %p768_p6 }
 0x1bf   : > { %s466_s16 = scalar_lea.sflag [#allocation6], %s465_s22 }
 0x1c0   : > { %p588_p1 = pneg %p587_p5 }
 0x1c2   : > { %681 = dma.done.wait (%p588_p1), %s466_s16, 32  }
 0x1c3   : > { %683 = vsyncadd (%p588_p1), %s466_s16, 4294967264  ;;  %p10_p2 = scmp.ge.s32.totalorder %s751_s18, 4   ;;  %s917_s12 = smov %s690_s13 }
 0x1c4   : > { %s918_s13 = smov %s694_s14  ;;  %s919_s14 = smov %s762_s23 }
 0x1c5   : > { %s920_s15 = smov %s751_s18  ;;  %12 = sbr.rel (!%p10_p2) target bundleno = 3 (0x3), region = 213 }
 0x1ca   :  { %478 = vsyncpa [#allocation6], 1 }
 0x1cb   :  { %480 = vsyncpa [#allocation6 + $0x1], 1 }

// kernel: custom-call.23
= control target key start
LH: loop header
LB: loop body
LE: loop exit
PB: predicated region body
PF: predicated region fallthrough
CT: control target
= control target key end

     0   :  { %s349_s6 = smov 0   ;;  %s351_s7 = smov 0   ;;  %s396_s0 = inlined_call_operand.vmem [shape: f32[2,1,3,3], index: 0, kind: input, shape index: {}]   ;;  %s397_s1 = inlined_call_operand.vmem [shape: f32[2,1,3,3], index: 1, kind: output, shape index: {}]  }
   0x1   :  { %s353_s8 = smov 0  }
   0x2 LB: > { %s275_s9 = sadd.s32 4294967295, %s336_s8   ;;  %s33_s10 = sadd.s32 1, %s332_s7  ;;  %s336_s8 = sphi %s353_s8, %s7_s8   ;;  %s332_s7 = sphi %s351_s7, %s399_s7   ;;  %s328_s6 = sphi %s349_s6, %s398_s6  }
   0x3   : > { %p35_p0 = scmp.ge.s32.totalorder %s33_s10, 2  ;;  %p277_p1 = scmp.ge.s32.totalorder %s336_s8, 2 }
   0x4   : > { %s49_s11 = sand.u32 (!%p277_p1), 1, %s336_s8   ;;  %s279_s12 = sshll.u32 (!%p277_p1), %s332_s7, 2 }
   0x5   : > { %s401_s10 = smov (%p35_p0, %s33_s10), 0  ;;  %47 = sbr.rel (%p277_p1) target bundleno = 12 (0xc), region = 16 }
   0x6   : > { %s278_s13 = sshll.u32 (!%p277_p1), %s49_s11, 2  ;;  %s56_s16 = scalar_lea.vmem (!%p277_p1), %s396_s0, %s279_s12 }
   0x7   : > { %s51_s17 = scalar_lea.vmem (!%p277_p1), [#allocation1], %s278_s13 }
   0xa   : > { %v73_v0 = vld [vmem:[%s56_s16] sm:$0xf] }
   0xb   : > { %74 = vst [vmem:[%s51_s17] sm:$0xf] %v73_v0 }
   0xc PF: > { %p280_p2 = scmp.ge.s32.totalorder %s336_s8, 1  ;;  %p91_p3 = scmp.lt.s32.totalorder %s336_s8, 3 }
   0xe   : > { %p92_p4 = pnand %p280_p2, %p91_p3 }
  0x10   : > { %95 = sbr.rel (%p92_p4) target bundleno = 500 (0x1f4), region = 50 }
  0x15   : > { %s376_s18 = sand.u32 1, %s275_s9   ;;  %v114_v1 = vlaneseq  ;;  %v338_v11 = vmov -1.0   ;;  %s284_s22 = sshll.u32 %s328_s6, 2 }
  0x16   : > { %s281_s19 = sshll.u32 %s376_s18, 2  ;;  %s182_s25 = scalar_lea.vmem %s397_s1, %s284_s22 }
  0x17   : > { %s104_s20 = scalar_lea.vmem [#allocation1], %s281_s19  ;;  %v115_v3 = vand.u32 127, %v114_v1  ;;  %v118_v4 = vshrl.u32 %v114_v1, 7  ;;  %s108_s21 = scalar_lea.vmem [#allocation3], %s281_s19 }
  0x18   : > { %v112_v2 = vld [vmem:[%s104_s20] sm:$0xf] }
  0x19   : > { %113 = vst [vmem:[#allocation0] sm:$0xf] %v112_v2  ;;  %vm116_vm0 = vcmp.lt.s32.totalorder %v115_v3, 3  ;;  %vm125_vm1 = vcmp.le.s32.totalorder %v118_v4, %v115_v3  ;;  %vm120_vm2 = vcmp.eq.s32.totalorder %v118_v4, %v115_v3  ;;  %vm139_vm4 = vcmp.eq.s32.totalorder %v115_v3, 2 }
  0x1a   : > { %vm126_vm3 = vmand %vm125_vm1, %vm116_vm0  ;;  %vm136_vm5 = vcmp.eq.s32.totalorder %v115_v3, %v118_v4  ;;  %v140_v12 = vsel %vm139_vm4, 1.0, %v338_v11  ;;  %vm147_vm6 = vcmp.eq.s32.totalorder %v115_v3, 1  ;;  %vm156_vm7 = vcmp.eq.s32.totalorder %v115_v3, 0 }
  0x1b   : > { %v141_v13 = vsel %vm136_vm5, %v140_v12, 0.0 }
  0x20   : > { %v121_v5 = vld [vmem:[#allocation0] sm:$0xff] }
  0x21   : > { %v122_v6 = vsel %vm120_vm2, %v121_v5, 0.0  ;;  %v127_v7 = vsel %vm126_vm3, %v121_v5, 0.0 }
  0x22   : > { %123 = vadd.xlane.f32.xlu0 %v122_v6 }
  0xab   : > { %v124_v8 = vpop.xlane.xlu0 %123 }
  0xac   : > { %312 = vrcp.f32 %v124_v8  ;;  %vm163_vm8 = vweird.f32 %v124_v8 }
  0xb9   : > { %v313_v9 = vpop.eup %312 }
  0xba   : > { %v129_v10 = vmul.f32 %v313_v9, %v127_v7 }
  0xbc   : > { %130 = vst [vmem:[#allocation4] sm:$0xff] %v129_v10 }
  0xc3   : > { %v143_v14 = vld [vmem:[#allocation4 + $0x1] ss:$0 sm:$0xff]  ;;  %v152_v17 = vld [vmem:[#allocation4] ss:$0 sm:$0xff] }
  0xc4   : > { %v144_v15 = vxor.u32 2147483648, %v143_v14  ;;  %v153_v19 = vxor.u32 2147483648, %v152_v17 }
  0xc6   : > { %v148_v16 = vmul.f32 %v144_v15, %v141_v13 }
  0xc8   : > { %149 = vadd.xlane.f32.xlu0 %v148_v16 }
 0x151   : > { %v150_v18 = vpop.xlane.xlu0 %149 }
 0x152   : > { %v151_v20 = vsel %vm147_vm6, %v150_v18, %v141_v13 }
 0x153   : > { %v157_v21 = vmul.f32 %v153_v19, %v151_v20 }
 0x155   : > { %158 = vadd.xlane.f32.xlu1 %v157_v21 }
 0x1de   : > { %v159_v22 = vpop.xlane.xlu1 %158 }
 0x1df   : > { %v160_v23 = vsel %vm156_vm7, %v159_v22, %v151_v20 }
 0x1e0   : > { %v162_v24 = vmul.f32 %v313_v9, %v160_v23 }
 0x1e2   : > { %v164_v25 = vsel %vm163_vm8, %v160_v23, %v162_v24 }
 0x1e3   : > { %165 = vst [vmem:[#allocation2] sm:$0xff] %v164_v25 }
 0x1ea   : > { %v170_v26 = vld [vmem:[#allocation2] sm:$0xf] }
 0x1eb   : > { %173 = vst [vmem:[%s108_s21] sm:$0xf] %v170_v26 }
 0x1f2   : > { %v199_v27 = vld [vmem:[%s108_s21] sm:$0xf] }
 0x1f3   : > { %200 = vst [vmem:[%s182_s25] sm:$0xf] %v199_v27 }
 0x1f4 PF: > { %s7_s8 = sadd.s32 1, %s336_s8   ;;  %s398_s6 = smov %s332_s7 }
 0x1f5   : > { %p4_p5 = scmp.ge.s32.totalorder %s7_s8, 4   ;;  %s399_s7 = smov %s401_s10 }
 0x1f7   :  { %6 = sbr.rel (!%p4_p5) target bundleno = 2 (0x2), region = 111 }

// kernel: custom-call.24
= control target key start
LH: loop header
LB: loop body
LE: loop exit
PB: predicated region body
PF: predicated region fallthrough
CT: control target
= control target key end

     0   :  { %s350_s6 = smov 0   ;;  %s352_s7 = smov 0   ;;  %s397_s0 = inlined_call_operand.vmem [shape: f32[2,1,3,3], index: 0, kind: input, shape index: {}]   ;;  %s398_s1 = inlined_call_operand.vmem [shape: f32[2,1,3,3], index: 1, kind: output, shape index: {}]  }
   0x1   :  { %s354_s8 = smov 0  }
   0x2 LB: > { %s276_s9 = sadd.s32 4294967295, %s337_s8   ;;  %s33_s10 = sadd.s32 1, %s333_s7  ;;  %s337_s8 = sphi %s354_s8, %s7_s8   ;;  %s333_s7 = sphi %s352_s7, %s400_s7   ;;  %s329_s6 = sphi %s350_s6, %s399_s6  }
   0x3   : > { %p35_p0 = scmp.ge.s32.totalorder %s33_s10, 2  ;;  %p278_p1 = scmp.ge.s32.totalorder %s337_s8, 2 }
   0x4   : > { %s49_s11 = sand.u32 (!%p278_p1), 1, %s337_s8   ;;  %s280_s12 = sshll.u32 (!%p278_p1), %s333_s7, 2 }
   0x5   : > { %s402_s10 = smov (%p35_p0, %s33_s10), 0  ;;  %47 = sbr.rel (%p278_p1) target bundleno = 12 (0xc), region = 16 }
   0x6   : > { %s279_s13 = sshll.u32 (!%p278_p1), %s49_s11, 2  ;;  %s56_s16 = scalar_lea.vmem (!%p278_p1), %s397_s0, %s280_s12 }
   0x7   : > { %s51_s17 = scalar_lea.vmem (!%p278_p1), [#allocation1], %s279_s13 }
   0xa   : > { %v73_v0 = vld [vmem:[%s56_s16] sm:$0xf] }
   0xb   : > { %74 = vst [vmem:[%s51_s17] sm:$0xf] %v73_v0 }
   0xc PF: > { %p281_p2 = scmp.ge.s32.totalorder %s337_s8, 1  ;;  %p91_p3 = scmp.lt.s32.totalorder %s337_s8, 3 }
   0xe   : > { %p92_p4 = pnand %p281_p2, %p91_p3 }
  0x10   : > { %95 = sbr.rel (%p92_p4) target bundleno = 500 (0x1f4), region = 50 }
  0x15   : > { %s377_s18 = sand.u32 1, %s276_s9   ;;  %v114_v1 = vlaneseq  ;;  %v339_v11 = vmov -1.0   ;;  %s285_s22 = sshll.u32 %s329_s6, 2 }
  0x16   : > { %s282_s19 = sshll.u32 %s377_s18, 2  ;;  %s183_s25 = scalar_lea.vmem %s398_s1, %s285_s22 }
  0x17   : > { %s104_s20 = scalar_lea.vmem [#allocation1], %s282_s19  ;;  %v115_v3 = vand.u32 127, %v114_v1  ;;  %v118_v4 = vshrl.u32 %v114_v1, 7  ;;  %s108_s21 = scalar_lea.vmem [#allocation3], %s282_s19 }
  0x18   : > { %v112_v2 = vld [vmem:[%s104_s20] sm:$0xf] }
  0x19   : > { %113 = vst [vmem:[#allocation0] sm:$0xf] %v112_v2  ;;  %vm116_vm0 = vcmp.lt.s32.totalorder %v115_v3, 3  ;;  %vm125_vm1 = vcmp.ge.s32.totalorder %v118_v4, %v115_v3  ;;  %vm120_vm2 = vcmp.eq.s32.totalorder %v118_v4, %v115_v3  ;;  %vm139_vm4 = vcmp.eq.s32.totalorder %v115_v3, 0 }
  0x1a   : > { %vm126_vm3 = vmand %vm125_vm1, %vm116_vm0  ;;  %vm136_vm5 = vcmp.eq.s32.totalorder %v115_v3, %v118_v4  ;;  %v140_v12 = vsel %vm139_vm4, 1.0, %v339_v11  ;;  %vm147_vm6 = vcmp.eq.s32.totalorder %v115_v3, 1  ;;  %vm157_vm7 = vcmp.eq.s32.totalorder %v115_v3, 2 }
  0x1b   : > { %v141_v13 = vsel %vm136_vm5, %v140_v12, 0.0 }
  0x20   : > { %v121_v5 = vld [vmem:[#allocation0] sm:$0xff] }
  0x21   : > { %v122_v6 = vsel %vm120_vm2, %v121_v5, 0.0  ;;  %v127_v7 = vsel %vm126_vm3, %v121_v5, 0.0 }
  0x22   : > { %123 = vadd.xlane.f32.xlu0 %v122_v6 }
  0xab   : > { %v124_v8 = vpop.xlane.xlu0 %123 }
  0xac   : > { %313 = vrcp.f32 %v124_v8  ;;  %vm164_vm8 = vweird.f32 %v124_v8 }
  0xb9   : > { %v314_v9 = vpop.eup %313 }
  0xba   : > { %v129_v10 = vmul.f32 %v314_v9, %v127_v7 }
  0xbc   : > { %130 = vst [vmem:[#allocation4] sm:$0xff] %v129_v10 }
  0xc3   : > { %v143_v14 = vld [vmem:[#allocation4 + $0x1] ss:$0 sm:$0xff]  ;;  %v153_v17 = vld [vmem:[#allocation4 + $0x2] ss:$0 sm:$0xff] }
  0xc4   : > { %v144_v15 = vxor.u32 2147483648, %v143_v14  ;;  %v154_v19 = vxor.u32 2147483648, %v153_v17 }
  0xc6   : > { %v148_v16 = vmul.f32 %v144_v15, %v141_v13 }
  0xc8   : > { %149 = vadd.xlane.f32.xlu0 %v148_v16 }
 0x151   : > { %v150_v18 = vpop.xlane.xlu0 %149 }
 0x152   : > { %v151_v20 = vsel %vm147_vm6, %v150_v18, %v141_v13 }
 0x153   : > { %v158_v21 = vmul.f32 %v154_v19, %v151_v20 }
 0x155   : > { %159 = vadd.xlane.f32.xlu1 %v158_v21 }
 0x1de   : > { %v160_v22 = vpop.xlane.xlu1 %159 }
 0x1df   : > { %v161_v23 = vsel %vm157_vm7, %v160_v22, %v151_v20 }
 0x1e0   : > { %v163_v24 = vmul.f32 %v314_v9, %v161_v23 }
 0x1e2   : > { %v165_v25 = vsel %vm164_vm8, %v161_v23, %v163_v24 }
 0x1e3   : > { %166 = vst [vmem:[#allocation2] sm:$0xff] %v165_v25 }
 0x1ea   : > { %v171_v26 = vld [vmem:[#allocation2] sm:$0xf] }
 0x1eb   : > { %174 = vst [vmem:[%s108_s21] sm:$0xf] %v171_v26 }
 0x1f2   : > { %v200_v27 = vld [vmem:[%s108_s21] sm:$0xf] }
 0x1f3   : > { %201 = vst [vmem:[%s183_s25] sm:$0xf] %v200_v27 }
 0x1f4 PF: > { %s7_s8 = sadd.s32 1, %s337_s8   ;;  %s399_s6 = smov %s333_s7 }
 0x1f5   : > { %p4_p5 = scmp.ge.s32.totalorder %s7_s8, 4   ;;  %s400_s7 = smov %s402_s10 }
 0x1f7   :  { %6 = sbr.rel (!%p4_p5) target bundleno = 2 (0x2), region = 112 }

// kernel: custom-call.25
= control target key start
LH: loop header
LB: loop body
LE: loop exit
PB: predicated region body
PF: predicated region fallthrough
CT: control target
= control target key end

     0   :  { %5 = vsyncpa [#allocation2], 0  ;;  %s946_s0 = inlined_call_operand.hbm [shape: f32[2,4,4], index: 0, kind: input, shape index: {}]   ;;  %s947_s1 = inlined_call_operand.vmem [shape: f32[2,4,4], index: 1, kind: output, shape index: {0}]   ;;  %s948_s2 = inlined_call_operand.hbm [shape: s32[2,4], index: 2, kind: output, shape index: {1}]   ;;  %s949_s3 = inlined_call_operand.vmem [shape: s32[2,4], index: 3, kind: output, shape index: {2}]  }
   0x1   :  { %7 = vsyncpa [#allocation2 + $0x1], 0 }
   0x2   :  { %8 = vsyncpa [#allocation3], 0 }
   0x3   :  { %10 = vsyncpa [#allocation3 + $0x1], 0  ;;  %s742_s12 = smov 0   ;;  %s744_s13 = smov 0  }
   0x4   :  { %s746_s14 = smov 0   ;;  %s748_s15 = smov 0  }
   0x5 LB: > { %s763_s16 = sadd.s32 4294967295, %s713_s15   ;;  %s547_s17 = sadd.s32 4294967294, %s713_s15   ;;  %s713_s15 = sphi %s748_s15, %s961_s15   ;;  %s709_s14 = sphi %s746_s14, %s960_s14   ;;  %s705_s13 = sphi %s744_s13, %s959_s13   ;;  %s701_s12 = sphi %s742_s12, %s958_s12  }
   0x6   : > { %s767_s18 = sadd.s32 1, %s713_s15   ;;  %s20_s19 = sshrl.u32 %s713_s15, 3 }
   0x7   : > { %s21_s20 = sshrl.u32 %s767_s18, 3  ;;  %s25_s21 = sadd.s32 1, %s709_s14 }
   0x8   : > { %s22_s22 = ssub.s32 %s20_s19, %s21_s20  ;;  %p35_p0 = scmp.ne.s32.totalorder %s709_s14, %s705_s13 }
   0x9   : > { %p23_p1 = scmp.eq.s32.totalorder %s22_s22, 0  ;;  %p36_p2 = scmp.eq.s32.totalorder %s763_s16, 1 }
   0xa   : > { %p41_p3 = scmp.ne.s32.totalorder %s705_s13, %s701_s12  ;;  %p42_p4 = scmp.eq.s32.totalorder %s547_s17, 1 }
   0xb   : > { %s778_s23 = scalar_select %p23_p1, %s709_s14, %s25_s21  }
   0xc   : > { %p780_p5 = por %p36_p2, %p35_p0  ;;  %p784_p6 = por %p42_p4, %p41_p3 }
   0xd   : > { %p576_p8 = scmp.lt.s32.totalorder %s713_s15, 2  ;;  %s87_s26 = sand.u32 1, %s713_s15  }
   0xe   : > { %s952_s25 = scalar_select %p784_p6, 1, 0 }
   0xf   : > { %s551_s27 = sshll.u32 %s713_s15, 6  ;;  %s550_s28 = sshll.u32 %s87_s26, 2 }
  0x10   : > { %s795_s4 = scalar_lea.hbm %s946_s0, %s551_s27  ;;  %s91_s5 = scalar_lea.vmem [#allocation1], %s550_s28 }
  0x11   : > { %s98_s6 = sshll.u32 %s91_s5, 4  ;;  %s88_s7 = scalar_lea.sflag [#allocation2], %s87_s26  ;;  %s99_s6 = int_to_ptr.vmem [resolvable:$true] %s98_s6 }
  0x12   : > { %s621_s8 = scalar_lea.hbm %s795_s4, 64  ;;  %s625_s11 = scalar_lea.hbm %s946_s0, 128 }
  0x13   : > { %p622_p11 = scmp.ne.s32.totalorder %s795_s4, %s621_s8  ;;  %p626_p0 = scmp.lt.s32.totalorder %s795_s4, %s946_s0 }
  0x14   : > { %p627_p1 = scmp.lt.s32.totalorder %s625_s11, %s621_s8 }
  0x15   : > { %p623_p12 = pnand %p622_p11, %p576_p8 }
  0x16   : > { %p628_p2 = por %p627_p1, %p626_p0 }
  0x17   : > { %p624_p13 = pneg %p623_p12 }
  0x19   : > { %p629_p3 = pnand %p628_p2, %p624_p13 }
  0x1b   : > { %632 = shalt.err (!%p629_p3)
}
  0x1c   : > { %s633_s20 = scalar_lea.vmem %s99_s6, 64  ;;  %s719_s21 = smov [#allocation1]  }
  0x1d   : > { %p634_p4 = scmp.ne.s32.totalorder %s99_s6, %s633_s20  ;;  %s637_s22 = sshll.u32 %s719_s21, 4  ;;  %s638_s22 = int_to_ptr.vmem [resolvable:$false] %s637_s22 }
  0x1e   : > { %s639_s26 = scalar_lea.vmem %s638_s22, 128  ;;  %p640_p11 = scmp.lt.s32.totalorder %s99_s6, %s638_s22 }
  0x1f   : > { %p635_p7 = pnand %p634_p4, %p576_p8  ;;  %p641_p12 = scmp.lt.s32.totalorder %s639_s26, %s633_s20 }
  0x21   : > { %p636_p9 = pneg %p635_p7  ;;  %p642_p10 = por %p641_p12, %p640_p11 }
  0x23   : > { %p643_p6 = pnand %p642_p10, %p636_p9 }
  0x25   : > { %646 = shalt.err (!%p643_p6)
}
  0x26   : > { %569 = dma.hbm_to_vmem [thread:$0]  (%p576_p8), %s795_s4, 64, %s99_s6, %s88_s7  }
  0x27   : > { %p953_p13 = scmp.lt.s32.totalorder %s713_s15, 3  ;;  %p954_p0 = scmp.ge.s32.totalorder %s713_s15, 1 }
  0x29   : > { %p104_p1 = pnand %p954_p0, %p953_p13 }
  0x2b   : > { %107 = sbr.rel (%p104_p1) target bundleno = 468 (0x1d4), region = 20 }
  0x30   : > { %s109_s27 = sand.u32 1, %s763_s16  }
  0x31   : > { %s110_s28 = scalar_lea.sflag [#allocation2], %s109_s27 }
  0x32   : > { %693 = dma.done.wait %s110_s28, 64  }
  0x33   : > { %694 = vsyncadd %s110_s28, 4294967232  ;;  %s820_s29 = sshll.u32 %s109_s27, 2  ;;  %s146_s30 = sand.u32 7, %s763_s16   ;;  %v151_v0 = vlaneseq  ;;  %v720_v2 = vmov 0  }
  0x34   : > { %s826_s4 = scalar_lea.vmem [#allocation6], %s146_s30  ;;  %s128_s5 = sand.u32 1, %s705_s13  }
  0x35   : > { %v824_v1 = vshrl.u32 %v151_v0, 7  ;;  %150 = vst [vmem:[%s826_s4] sm:$0x1] %v720_v2  ;;  %s833_s6 = sshll.u32 %s128_s5, 1  ;;  %s119_s7 = scalar_lea.vmem [#allocation1], %s820_s29 }
  0x36   : > { %v140_v3 = vld [vmem:[%s119_s7] sm:$0xf]  ;;  %s123_s8 = scalar_lea.vmem [#allocation5], %s820_s29  ;;  %s130_s9 = scalar_lea.vmem [#allocation7], %s833_s6 }
  0x37   : > { %155 = vst [vmem:[#allocation10] sm:$0xff] %v824_v1  ;;  %141 = vst [vmem:[#allocation0] sm:$0xf] %v140_v3  ;;  %s136_s10 = scalar_lea.vmem [#allocation9], %s833_s6  ;;  %s839_s11 = scalar_lea.vmem [#allocation8], %s146_s30 }
  0x38   : > { %s841_s17 = smov 0  }
  0x3e   : > { %v144_v4 = vld [vmem:[#allocation0] sm:$0xff] }
  0x3f   : > { %145 = vst [vmem:[#allocation4] sm:$0xff] %v144_v4 }
  0x40 LB: >> { %vm171_vm0 = vcmp.lt.s32.totalorder %v824_v1, 4  ;;  %v848_v7 = vstv %s717_s17  ;;  %s212_s19 = ssub.s32 128, %s717_s17  ;;  %v218_v37 = vand.u32 127, %v151_v0  ;;  %v221_v39 = vld [vmem:[%s826_s4] ss:$0 sm:$0xff]  ;;  %s224_s20 = scalar_lea.vmem [#allocation4], %s717_s17  ;;  %s717_s17 = sphi %s841_s17, %s161_s17  }
  0x41   : >> { %vm170_vm1 = vcmp.ge.s32.totalorder %v824_v1, %v848_v7  ;;  %s230_s22 = scalar_lea.vmem [#allocation10], %s717_s17  ;;  %vm250_vm15 = vcmp.gt.s32.totalorder %v824_v1, %v848_v7  ;;  %s161_s17 = sadd.s32 1, %s717_s17  }
  0x42   : >> { %vm172_vm3 = vmand %vm170_vm1, %vm171_vm0  ;;  %vm242_vm12 = vcmp.gt.s32.totalorder %v218_v37, %v848_v7  ;;  %vm219_vm13 = vcmp.eq.s32.totalorder %v218_v37, %v848_v7  ;;  %v232_v41 = vld [vmem:[%s230_s22] ss:$0 sm:$0xff]  ;;  %p158_p6 = scmp.ge.s32.totalorder %s161_s17, 4  }
  0x43   : >> { %vm254_vm1 = vmand %vm250_vm15, %vm219_vm13  ;;  %s950_s28 = sshrl.u32 (%p158_p6), %s763_s16, 3  ;;  %s561_s30 = sshll.u32 (%p158_p6), %s763_s16, 2 }
  0x44   : > { %s562_s7 = sshll.u32 (%p158_p6), %s950_s28, 5 }
  0x46   : >> { %v166_v5 = vld [vmem:[#allocation4] sm:$0xff]  ;;  %v226_v40 = vld [vmem:[%s224_s20] ss:$0 sm:$0xff] }
  0x47   : >> { %v167_v6 = vand.u32 2147483647, %v166_v5 }
  0x49   : >> { %vm557_vm2 = vcmp.gt.f32.partialorder %v167_v6, -inf }
  0x4a   : >> { %vm174_vm4 = vmand %vm172_vm3, %vm557_vm2 }
  0x4b   : >> { %v175_v8 = vsel %vm174_vm4, %v824_v1, %v848_v7  ;;  %v176_v9 = vsel %vm174_vm4, %v167_v6, -inf }
  0x4c   : >> { %v177_v10 = vrot.slane %v176_v9, 1  ;;  %v178_v11 = vrot.slane %v175_v8, 1 }
  0x4e   : >> { %vm179_vm5 = vcmp.ge.f32.partialorder %v177_v10, %v176_v9  ;;  %v182_v12 = vrot.slane %v177_v10, 1  ;;  %v183_v13 = vrot.slane %v178_v11, 1 }
  0x4f   : >> { %v180_v14 = vsel %vm179_vm5, %v177_v10, %v176_v9  ;;  %v181_v15 = vsel %vm179_vm5, %v178_v11, %v175_v8 }
  0x50   : >> { %vm184_vm6 = vcmp.ge.f32.partialorder %v182_v12, %v180_v14  ;;  %v187_v16 = vrot.slane %v182_v12, 1  ;;  %v188_v17 = vrot.slane %v183_v13, 1 }
  0x51   : >> { %v185_v18 = vsel %vm184_vm6, %v182_v12, %v180_v14  ;;  %v186_v19 = vsel %vm184_vm6, %v183_v13, %v181_v15 }
  0x52   : >> { %vm189_vm7 = vcmp.ge.f32.partialorder %v187_v16, %v185_v18  ;;  %v192_v20 = vrot.slane %v187_v16, 1  ;;  %v193_v21 = vrot.slane %v188_v17, 1 }
  0x53   : >> { %v190_v22 = vsel %vm189_vm7, %v187_v16, %v185_v18  ;;  %v191_v23 = vsel %vm189_vm7, %v188_v17, %v186_v19 }
  0x54   : >> { %vm194_vm8 = vcmp.ge.f32.partialorder %v192_v20, %v190_v22  ;;  %v197_v24 = vrot.slane %v192_v20, 1  ;;  %v198_v25 = vrot.slane %v193_v21, 1 }
  0x55   : >> { %v195_v26 = vsel %vm194_vm8, %v192_v20, %v190_v22  ;;  %v196_v27 = vsel %vm194_vm8, %v193_v21, %v191_v23 }
  0x56   : >> { %vm199_vm9 = vcmp.ge.f32.partialorder %v197_v24, %v195_v26  ;;  %v202_v28 = vrot.slane %v197_v24, 1  ;;  %v203_v29 = vrot.slane %v198_v25, 1 }
  0x57   : >> { %v200_v30 = vsel %vm199_vm9, %v197_v24, %v195_v26  ;;  %v201_v31 = vsel %vm199_vm9, %v198_v25, %v196_v27 }
  0x58   : >> { %vm204_vm10 = vcmp.ge.f32.partialorder %v202_v28, %v200_v30  ;;  %v207_v32 = vrot.slane %v202_v28, 1  ;;  %v208_v33 = vrot.slane %v203_v29, 1 }
  0x59   : >> { %v205_v34 = vsel %vm204_vm10, %v202_v28, %v200_v30  ;;  %v206_v35 = vsel %vm204_vm10, %v203_v29, %v201_v31 }
  0x5a   : >> { %vm209_vm11 = vcmp.ge.f32.partialorder %v207_v32, %v205_v34 }
  0x5b   : >> { %v211_v36 = vsel %vm209_vm11, %v208_v33, %v206_v35 }
  0x5c   : >> { %213 = vrot.lane.b32.xlu0 %v211_v36, %s212_s19  ;;  %s886_s19 = scalar_lea.vmem (%p158_p6), %s947_s1, %s561_s30 }
  0xce   : >> { %v214_v38 = vpop.permute.xlu0 %213 }
  0xcf   : >> { %566 = vpush %v214_v38 }
 0x100   : >> { %s567_s21 = spop %566 }
 0x101   : >> { %v220_v42 = vstv %s567_s21  ;;  %s225_s26 = scalar_lea.vmem [#allocation4], %s567_s21  ;;  %s231_s27 = scalar_lea.vmem [#allocation10], %s567_s21 }
 0x102   : >> { %v227_v43 = vld [vmem:[%s225_s26] ss:$0 sm:$0xff]  ;;  %v222_v45 = vsel %vm219_vm13, %v220_v42, %v221_v39 }
 0x103   : >> { %v233_v44 = vld [vmem:[%s231_s27] ss:$0 sm:$0xff]  ;;  %228 = vst [vmem:[%s225_s26] sm:$0x1] %v226_v40  ;;  %vm236_vm14 = vcmp.ne.f32.partialorder %v227_v43, 0.0  ;;  %223 = vst [vmem:[%s826_s4] sm:$0x1] %v222_v45  ;;  %v243_v52 = vsel %vm242_vm12, %v227_v43, 0.0 }
 0x104   : >> { %234 = vst [vmem:[%s231_s27] sm:$0x1] %v232_v41  ;;  %229 = vst [vmem:[%s224_s20] sm:$0x1] %v227_v43  ;;  %s392_s26 = sshll.u32 (%p158_p6), %s130_s9, 4  ;;  %s339_s27 = scalar_lea.sflag (%p158_p6), [#allocation3], %s128_s5  ;;  %s393_s26 = int_to_ptr.vmem [resolvable:$true] %s392_s26 }
 0x105   : >> { %235 = vst [vmem:[%s230_s22] sm:$0x1] %v233_v44  ;;  %vm237_vm0 = vmand %vm219_vm13, %vm236_vm14  ;;  %s891_s22 = scalar_lea.hbm (%p158_p6), %s948_s2, %s562_s7  ;;  %s647_s28 = scalar_lea.vmem (%p158_p6), %s393_s26, 32 }
 0x106   : >> { %v238_v46 = vsel %vm237_vm0, %v227_v43, 1.0  ;;  %p648_p7 = scmp.ne.s32.totalorder (%p158_p6), %s393_s26, %s647_s28  ;;  %s721_s4 = smov (%p158_p6), [#allocation7]  }
 0x107   : >> { %v251_v47 = vsel %vm250_vm15, %v238_v46, 1.0  ;;  %s651_s30 = sshll.u32 (%p158_p6), %s721_s4, 4  ;;  %s652_s30 = int_to_ptr.vmem [resolvable:$false] %s651_s30 }
 0x108   : >> { %619 = vrcp.f32 %v251_v47  ;;  %p649_p8 = pnand (%p158_p6), %p648_p7, %p780_p5  ;;  %s653_s17 = scalar_lea.vmem (%p158_p6), %s652_s30, 64 }
 0x109   : > { %p654_p10 = scmp.lt.s32.totalorder (%p158_p6), %s393_s26, %s652_s30  ;;  %p655_p2 = scmp.lt.s32.totalorder (%p158_p6), %s653_s17, %s647_s28 }
 0x10a   : > { %v322_v58 = vld [vmem:[#allocation6] sm:$0x3] (%p158_p6)  ;;  %p650_p9 = pneg (%p158_p6), %p649_p8 }
 0x10b   : >> { %v247_v49 = vld [vmem:[#allocation4] sm:$0xff]  ;;  %325 = vst [vmem:[%s130_s9] sm:$0x3] (%p158_p6), %v322_v58  ;;  %p656_p3 = por (%p158_p6), %p655_p2, %p654_p10 }
 0x10c   : > { %v261_v56 = vld [vmem:[#allocation10] sm:$0xff] (%p158_p6) }
 0x10d   : > { %p657_p4 = pnand (%p158_p6), %p656_p3, %p650_p9 }
 0x115   : >> { %v620_v48 = vpop.eup %619 }
 0x116   : >> { %v253_v50 = vmul.f32 %v620_v48, %v247_v49 }
 0x118   : >> { %v255_v51 = vsel %vm254_vm1, %v253_v50, 0.0 }
 0x119   : >> { %256 = vadd.xlane.f32.xlu0 %v255_v51 }
 0x146   : > { %277 = vxpose.xlu0.b32.start.end [1/1] (short) (narrow) (%p158_p6), %v261_v56, 8 }
 0x1a2   : >> { %v257_v53 = vpop.xlane.xlu0 %256 }
 0x1a3   : >> { %v258_v54 = vmul.f32 %v257_v53, %v243_v52  ;;  %160 = sbr.rel (!%p158_p6) target bundleno = 64 (0x40), region = 173 }
 0x1a5   : >> { %v259_v55 = vsub.f32 %v253_v50, %v258_v54 }
 0x1a7   : >> { %260 = vst [vmem:[#allocation4] sm:$0xff] %v259_v55 }
 0x1ae   : > { %v314_v57 = vld [vmem:[#allocation4] sm:$0xf] }
 0x1af   : > { %317 = vst [vmem:[%s123_s8] sm:$0xf] %v314_v57 }
 0x1b6   : > { %v365_v59 = vld [vmem:[%s123_s8] sm:$0xf] }
 0x1b7   : > { %660 = shalt.err (!%p657_p4)
}
 0x1b8   : > { %s661_s29 = scalar_lea.hbm %s891_s22, 32  ;;  %s665_s9 = scalar_lea.hbm %s948_s2, 32 }
 0x1b9   : > { %p662_p11 = scmp.ne.s32.totalorder %s891_s22, %s661_s29  ;;  %p666_p0 = scmp.lt.s32.totalorder %s891_s22, %s948_s2 }
 0x1ba   : > { %p667_p1 = scmp.lt.s32.totalorder %s665_s9, %s661_s29 }
 0x1bb   : > { %p663_p12 = pnand %p662_p11, %p780_p5 }
 0x1bc   : > { %p668_p6 = por %p667_p1, %p666_p0 }
 0x1bd   : > { %p664_p13 = pneg %p663_p12 }
 0x1bf   : > { %p669_p7 = pnand %p668_p6, %p664_p13 }
 0x1c1   : > { %672 = shalt.err (!%p669_p7)
}
 0x1c2   : > { %570 = dma.vmem_to_hbm [thread:$0]  (%p780_p5), %s393_s26, 32, %s891_s22, %s339_s27   ;;  %366 = vst [vmem:[%s886_s19] sm:$0xf] %v365_v59  ;;  %v293_v60 = vpop.trf.xlu0 }
 0x1c3   : > { %309 = vst [vmem:[%s839_s11] sm:$0x1] %v293_v60  ;;  %s955_s28 = sshrl.u32 (%p780_p5), %s763_s16, 3 }
 0x1c4   : > { %s563_s21 = sshll.u32 (%p780_p5), %s955_s28, 1 }
 0x1c5   : > { %s401_s17 = scalar_lea.vmem (%p780_p5), %s949_s3, %s563_s21 }
 0x1c7   : > { %398 = sbr.rel (!%p780_p5) target bundleno = 468 (0x1d4), region = 66 }
 0x1ca   : > { %v330_v61 = vld [vmem:[#allocation8] sm:$0x3] }
 0x1cb   : > { %333 = vst [vmem:[%s136_s10] sm:$0x3] %v330_v61 }
 0x1d2   : > { %v418_v62 = vld [vmem:[%s136_s10] sm:$0x3] }
 0x1d3   : > { %419 = vst [vmem:[%s401_s17] sm:$0x3] %v418_v62 }
 0x1d4 PF: > { %s447_s11 = sand.u32 1, %s701_s12   ;;  %p956_p8 = scmp.ne.s32.totalorder %s952_s25, 0 }
 0x1d5   : > { %p957_p9 = scmp.ge.s32.totalorder %s713_s15, 2  ;;  %s448_s16 = scalar_lea.sflag [#allocation3], %s447_s11 }
 0x1d7   : > { %p573_p5 = pnand %p957_p9, %p956_p8 }
 0x1d9   : > { %p574_p10 = pneg %p573_p5 }
 0x1db   : > { %696 = dma.done.wait (%p574_p10), %s448_s16, 32  }
 0x1dc   : > { %698 = vsyncadd (%p574_p10), %s448_s16, 4294967264  ;;  %p13_p2 = scmp.ge.s32.totalorder %s767_s18, 4   ;;  %s958_s12 = smov %s705_s13 }
 0x1dd   : > { %s959_s13 = smov %s709_s14  ;;  %s960_s14 = smov %s778_s23 }
 0x1de   : > { %s961_s15 = smov %s767_s18  ;;  %15 = sbr.rel (!%p13_p2) target bundleno = 5 (0x5), region = 184 }
 0x1e3   :  { %460 = vsyncpa [#allocation2], 1 }
 0x1e4   :  { %462 = vsyncpa [#allocation2 + $0x1], 1 }
 0x1e5   :  { %463 = vsyncpa [#allocation3], 1 }
 0x1e6   :  { %465 = vsyncpa [#allocation3 + $0x1], 1 }

// kernel: custom-call.26
= control target key start
LH: loop header
LB: loop body
LE: loop exit
PB: predicated region body
PF: predicated region fallthrough
CT: control target
= control target key end

     0   :  { %s359_s6 = smov 0   ;;  %s361_s7 = smov 0   ;;  %s406_s0 = inlined_call_operand.vmem [shape: f32[2,1,4,4], index: 0, kind: input, shape index: {}]   ;;  %s407_s1 = inlined_call_operand.vmem [shape: f32[2,1,4,4], index: 1, kind: output, shape index: {}]  }
   0x1   :  { %s363_s8 = smov 0  }
   0x2 LB: > { %s285_s9 = sadd.s32 4294967295, %s346_s8   ;;  %s33_s10 = sadd.s32 1, %s342_s7  ;;  %s346_s8 = sphi %s363_s8, %s7_s8   ;;  %s342_s7 = sphi %s361_s7, %s409_s7   ;;  %s338_s6 = sphi %s359_s6, %s408_s6  }
   0x3   : > { %p35_p0 = scmp.ge.s32.totalorder %s33_s10, 2  ;;  %p287_p1 = scmp.ge.s32.totalorder %s346_s8, 2 }
   0x4   : > { %s49_s11 = sand.u32 (!%p287_p1), 1, %s346_s8   ;;  %s289_s12 = sshll.u32 (!%p287_p1), %s342_s7, 2 }
   0x5   : > { %s411_s10 = smov (%p35_p0, %s33_s10), 0  ;;  %47 = sbr.rel (%p287_p1) target bundleno = 12 (0xc), region = 16 }
   0x6   : > { %s288_s13 = sshll.u32 (!%p287_p1), %s49_s11, 2  ;;  %s56_s16 = scalar_lea.vmem (!%p287_p1), %s406_s0, %s289_s12 }
   0x7   : > { %s51_s17 = scalar_lea.vmem (!%p287_p1), [#allocation1], %s288_s13 }
   0xa   : > { %v73_v0 = vld [vmem:[%s56_s16] sm:$0xf] }
   0xb   : > { %74 = vst [vmem:[%s51_s17] sm:$0xf] %v73_v0 }
   0xc PF: > { %p290_p2 = scmp.ge.s32.totalorder %s346_s8, 1  ;;  %p91_p3 = scmp.lt.s32.totalorder %s346_s8, 3 }
   0xe   : > { %p92_p4 = pnand %p290_p2, %p91_p3 }
  0x10   : > { %95 = sbr.rel (%p92_p4) target bundleno = 641 (0x281), region = 50 }
  0x15   : > { %s386_s18 = sand.u32 1, %s285_s9   ;;  %v114_v1 = vlaneseq  ;;  %v348_v11 = vmov -1.0   ;;  %s294_s22 = sshll.u32 %s338_s6, 2 }
  0x16   : > { %s291_s19 = sshll.u32 %s386_s18, 2  ;;  %s192_s25 = scalar_lea.vmem %s407_s1, %s294_s22 }
  0x17   : > { %s104_s20 = scalar_lea.vmem [#allocation1], %s291_s19  ;;  %v115_v3 = vand.u32 127, %v114_v1  ;;  %v118_v4 = vshrl.u32 %v114_v1, 7  ;;  %s108_s21 = scalar_lea.vmem [#allocation3], %s291_s19 }
  0x18   : > { %v112_v2 = vld [vmem:[%s104_s20] sm:$0xf] }
  0x19   : > { %113 = vst [vmem:[#allocation0] sm:$0xf] %v112_v2  ;;  %vm116_vm0 = vcmp.lt.s32.totalorder %v115_v3, 4  ;;  %vm125_vm1 = vcmp.le.s32.totalorder %v118_v4, %v115_v3  ;;  %vm120_vm2 = vcmp.eq.s32.totalorder %v118_v4, %v115_v3  ;;  %vm139_vm4 = vcmp.eq.s32.totalorder %v115_v3, 3 }
  0x1a   : > { %vm126_vm3 = vmand %vm125_vm1, %vm116_vm0  ;;  %vm136_vm5 = vcmp.eq.s32.totalorder %v115_v3, %v118_v4  ;;  %v140_v12 = vsel %vm139_vm4, 1.0, %v348_v11  ;;  %vm147_vm6 = vcmp.eq.s32.totalorder %v115_v3, 2  ;;  %vm157_vm7 = vcmp.eq.s32.totalorder %v115_v3, 1 }
  0x1b   : > { %v141_v13 = vsel %vm136_vm5, %v140_v12, 0.0  ;;  %vm166_vm8 = vcmp.eq.s32.totalorder %v115_v3, 0 }
  0x20   : > { %v121_v5 = vld [vmem:[#allocation0] sm:$0xff] }
  0x21   : > { %v122_v6 = vsel %vm120_vm2, %v121_v5, 0.0  ;;  %v127_v7 = vsel %vm126_vm3, %v121_v5, 0.0 }
  0x22   : > { %123 = vadd.xlane.f32.xlu0 %v122_v6 }
  0xab   : > { %v124_v8 = vpop.xlane.xlu0 %123 }
  0xac   : > { %322 = vrcp.f32 %v124_v8  ;;  %vm173_vm9 = vweird.f32 %v124_v8 }
  0xb9   : > { %v323_v9 = vpop.eup %322 }
  0xba   : > { %v129_v10 = vmul.f32 %v323_v9, %v127_v7 }
  0xbc   : > { %130 = vst [vmem:[#allocation4] sm:$0xff] %v129_v10 }
  0xc3   : > { %v143_v14 = vld [vmem:[#allocation4 + $0x2] ss:$0 sm:$0xff]  ;;  %v153_v17 = vld [vmem:[#allocation4 + $0x1] ss:$0 sm:$0xff]  ;;  %v162_v22 = vld [vmem:[#allocation4] ss:$0 sm:$0xff] }
  0xc4   : > { %v144_v15 = vxor.u32 2147483648, %v143_v14  ;;  %v154_v19 = vxor.u32 2147483648, %v153_v17  ;;  %v163_v24 = vxor.u32 2147483648, %v162_v22 }
  0xc6   : > { %v148_v16 = vmul.f32 %v144_v15, %v141_v13 }
  0xc8   : > { %149 = vadd.xlane.f32.xlu0 %v148_v16 }
 0x151   : > { %v150_v18 = vpop.xlane.xlu0 %149 }
 0x152   : > { %v151_v20 = vsel %vm147_vm6, %v150_v18, %v141_v13 }
 0x153   : > { %v158_v21 = vmul.f32 %v154_v19, %v151_v20 }
 0x155   : > { %159 = vadd.xlane.f32.xlu1 %v158_v21 }
 0x1de   : > { %v160_v23 = vpop.xlane.xlu1 %159 }
 0x1df   : > { %v161_v25 = vsel %vm157_vm7, %v160_v23, %v151_v20 }
 0x1e0   : > { %v167_v26 = vmul.f32 %v163_v24, %v161_v25 }
 0x1e2   : > { %168 = vadd.xlane.f32.xlu1 %v167_v26 }
 0x26b   : > { %v169_v27 = vpop.xlane.xlu1 %168 }
 0x26c   : > { %v170_v28 = vsel %vm166_vm8, %v169_v27, %v161_v25 }
 0x26d   : > { %v172_v29 = vmul.f32 %v323_v9, %v170_v28 }
 0x26f   : > { %v174_v30 = vsel %vm173_vm9, %v170_v28, %v172_v29 }
 0x270   : > { %175 = vst [vmem:[#allocation2] sm:$0xff] %v174_v30 }
 0x277   : > { %v180_v31 = vld [vmem:[#allocation2] sm:$0xf] }
 0x278   : > { %183 = vst [vmem:[%s108_s21] sm:$0xf] %v180_v31 }
 0x27f   : > { %v209_v32 = vld [vmem:[%s108_s21] sm:$0xf] }
 0x280   : > { %210 = vst [vmem:[%s192_s25] sm:$0xf] %v209_v32 }
 0x281 PF: > { %s7_s8 = sadd.s32 1, %s346_s8   ;;  %s408_s6 = smov %s342_s7 }
 0x282   : > { %p4_p5 = scmp.ge.s32.totalorder %s7_s8, 4   ;;  %s409_s7 = smov %s411_s10 }
 0x284   :  { %6 = sbr.rel (!%p4_p5) target bundleno = 2 (0x2), region = 112 }

// kernel: custom-call.27
= control target key start
LH: loop header
LB: loop body
LE: loop exit
PB: predicated region body
PF: predicated region fallthrough
CT: control target
= control target key end

     0   :  { %s360_s6 = smov 0   ;;  %s362_s7 = smov 0   ;;  %s407_s0 = inlined_call_operand.vmem [shape: f32[2,1,4,4], index: 0, kind: input, shape index: {}]   ;;  %s408_s1 = inlined_call_operand.vmem [shape: f32[2,1,4,4], index: 1, kind: output, shape index: {}]  }
   0x1   :  { %s364_s8 = smov 0  }
   0x2 LB: > { %s286_s9 = sadd.s32 4294967295, %s347_s8   ;;  %s33_s10 = sadd.s32 1, %s343_s7  ;;  %s347_s8 = sphi %s364_s8, %s7_s8   ;;  %s343_s7 = sphi %s362_s7, %s410_s7   ;;  %s339_s6 = sphi %s360_s6, %s409_s6  }
   0x3   : > { %p35_p0 = scmp.ge.s32.totalorder %s33_s10, 2  ;;  %p288_p1 = scmp.ge.s32.totalorder %s347_s8, 2 }
   0x4   : > { %s49_s11 = sand.u32 (!%p288_p1), 1, %s347_s8   ;;  %s290_s12 = sshll.u32 (!%p288_p1), %s343_s7, 2 }
   0x5   : > { %s412_s10 = smov (%p35_p0, %s33_s10), 0  ;;  %47 = sbr.rel (%p288_p1) target bundleno = 12 (0xc), region = 16 }
   0x6   : > { %s289_s13 = sshll.u32 (!%p288_p1), %s49_s11, 2  ;;  %s56_s16 = scalar_lea.vmem (!%p288_p1), %s407_s0, %s290_s12 }
   0x7   : > { %s51_s17 = scalar_lea.vmem (!%p288_p1), [#allocation1], %s289_s13 }
   0xa   : > { %v73_v0 = vld [vmem:[%s56_s16] sm:$0xf] }
   0xb   : > { %74 = vst [vmem:[%s51_s17] sm:$0xf] %v73_v0 }
   0xc PF: > { %p291_p2 = scmp.ge.s32.totalorder %s347_s8, 1  ;;  %p91_p3 = scmp.lt.s32.totalorder %s347_s8, 3 }
   0xe   : > { %p92_p4 = pnand %p291_p2, %p91_p3 }
  0x10   : > { %95 = sbr.rel (%p92_p4) target bundleno = 641 (0x281), region = 50 }
  0x15   : > { %s387_s18 = sand.u32 1, %s286_s9   ;;  %v114_v1 = vlaneseq  ;;  %v349_v11 = vmov -1.0   ;;  %s295_s22 = sshll.u32 %s339_s6, 2 }
  0x16   : > { %s292_s19 = sshll.u32 %s387_s18, 2  ;;  %s193_s25 = scalar_lea.vmem %s408_s1, %s295_s22 }
  0x17   : > { %s104_s20 = scalar_lea.vmem [#allocation1], %s292_s19  ;;  %v115_v3 = vand.u32 127, %v114_v1  ;;  %v118_v4 = vshrl.u32 %v114_v1, 7  ;;  %s108_s21 = scalar_lea.vmem [#allocation3], %s292_s19 }
  0x18   : > { %v112_v2 = vld [vmem:[%s104_s20] sm:$0xf] }
  0x19   : > { %113 = vst [vmem:[#allocation0] sm:$0xf] %v112_v2  ;;  %vm116_vm0 = vcmp.lt.s32.totalorder %v115_v3, 4  ;;  %vm125_vm1 = vcmp.ge.s32.totalorder %v118_v4, %v115_v3  ;;  %vm120_vm2 = vcmp.eq.s32.totalorder %v118_v4, %v115_v3  ;;  %vm139_vm4 = vcmp.eq.s32.totalorder %v115_v3, 0 }
  0x1a   : > { %vm126_vm3 = vmand %vm125_vm1, %vm116_vm0  ;;  %vm136_vm5 = vcmp.eq.s32.totalorder %v115_v3, %v118_v4  ;;  %v140_v12 = vsel %vm139_vm4, 1.0, %v349_v11  ;;  %vm147_vm6 = vcmp.eq.s32.totalorder %v115_v3, 1  ;;  %vm157_vm7 = vcmp.eq.s32.totalorder %v115_v3, 2 }
  0x1b   : > { %v141_v13 = vsel %vm136_vm5, %v140_v12, 0.0  ;;  %vm167_vm8 = vcmp.eq.s32.totalorder %v115_v3, 3 }
  0x20   : > { %v121_v5 = vld [vmem:[#allocation0] sm:$0xff] }
  0x21   : > { %v122_v6 = vsel %vm120_vm2, %v121_v5, 0.0  ;;  %v127_v7 = vsel %vm126_vm3, %v121_v5, 0.0 }
  0x22   : > { %123 = vadd.xlane.f32.xlu0 %v122_v6 }
  0xab   : > { %v124_v8 = vpop.xlane.xlu0 %123 }
  0xac   : > { %323 = vrcp.f32 %v124_v8  ;;  %vm174_vm9 = vweird.f32 %v124_v8 }
  0xb9   : > { %v324_v9 = vpop.eup %323 }
  0xba   : > { %v129_v10 = vmul.f32 %v324_v9, %v127_v7 }
  0xbc   : > { %130 = vst [vmem:[#allocation4] sm:$0xff] %v129_v10 }
  0xc3   : > { %v143_v14 = vld [vmem:[#allocation4 + $0x1] ss:$0 sm:$0xff]  ;;  %v153_v17 = vld [vmem:[#allocation4 + $0x2] ss:$0 sm:$0xff]  ;;  %v163_v22 = vld [vmem:[#allocation4 + $0x3] ss:$0 sm:$0xff] }
  0xc4   : > { %v144_v15 = vxor.u32 2147483648, %v143_v14  ;;  %v154_v19 = vxor.u32 2147483648, %v153_v17  ;;  %v164_v24 = vxor.u32 2147483648, %v163_v22 }
  0xc6   : > { %v148_v16 = vmul.f32 %v144_v15, %v141_v13 }
  0xc8   : > { %149 = vadd.xlane.f32.xlu0 %v148_v16 }
 0x151   : > { %v150_v18 = vpop.xlane.xlu0 %149 }
 0x152   : > { %v151_v20 = vsel %vm147_vm6, %v150_v18, %v141_v13 }
 0x153   : > { %v158_v21 = vmul.f32 %v154_v19, %v151_v20 }
 0x155   : > { %159 = vadd.xlane.f32.xlu1 %v158_v21 }
 0x1de   : > { %v160_v23 = vpop.xlane.xlu1 %159 }
 0x1df   : > { %v161_v25 = vsel %vm157_vm7, %v160_v23, %v151_v20 }
 0x1e0   : > { %v168_v26 = vmul.f32 %v164_v24, %v161_v25 }
 0x1e2   : > { %169 = vadd.xlane.f32.xlu1 %v168_v26 }
 0x26b   : > { %v170_v27 = vpop.xlane.xlu1 %169 }
 0x26c   : > { %v171_v28 = vsel %vm167_vm8, %v170_v27, %v161_v25 }
 0x26d   : > { %v173_v29 = vmul.f32 %v324_v9, %v171_v28 }
 0x26f   : > { %v175_v30 = vsel %vm174_vm9, %v171_v28, %v173_v29 }
 0x270   : > { %176 = vst [vmem:[#allocation2] sm:$0xff] %v175_v30 }
 0x277   : > { %v181_v31 = vld [vmem:[#allocation2] sm:$0xf] }
 0x278   : > { %184 = vst [vmem:[%s108_s21] sm:$0xf] %v181_v31 }
 0x27f   : > { %v210_v32 = vld [vmem:[%s108_s21] sm:$0xf] }
 0x280   : > { %211 = vst [vmem:[%s193_s25] sm:$0xf] %v210_v32 }
 0x281 PF: > { %s7_s8 = sadd.s32 1, %s347_s8   ;;  %s409_s6 = smov %s343_s7 }
 0x282   : > { %p4_p5 = scmp.ge.s32.totalorder %s7_s8, 4   ;;  %s410_s7 = smov %s412_s10 }
 0x284   :  { %6 = sbr.rel (!%p4_p5) target bundleno = 2 (0x2), region = 113 }

// kernel: _forward_points.1
= control target key start
LH: loop header
LB: loop body
LE: loop exit
PB: predicated region body
PF: predicated region fallthrough
CT: control target
= control target key end

     0   :  { %9 = vsyncpa [#allocation3], 0  ;;  %s854_s15 = smov 0   ;;  %s856_s16 = smov 0   ;;  %s1106_s0 = inlined_call_operand.vmem [shape: f32[2,30], index: 0, kind: input, shape index: {}]   ;;  %s1107_s1 = inlined_call_operand.vmem [shape: f32[8,128], index: 1, kind: input, shape index: {}]   ;;  %s1108_s2 = inlined_call_operand.vmem [shape: f32[8,128], index: 2, kind: input, shape index: {}]   ;;  %s1109_s3 = inlined_call_operand.vmem [shape: f32[2,8,128], index: 3, kind: input, shape index: {}]   ;;  %s1110_s4 = inlined_call_operand.vmem [shape: f32[2,3,8,128], index: 4, kind: output, shape index: {}]  }
   0x1   :  { %s858_s17 = smov 0  }
   0x2 LB: > { %s723_s18 = sadd.s32 4294967295, %s826_s17   ;;  %s24_s19 = sadd.s32 1, %s822_s16  ;;  %s826_s17 = sphi %s858_s17, %s15_s17   ;;  %s822_s16 = sphi %s856_s16, %s1114_s16   ;;  %s818_s15 = sphi %s854_s15, %s1113_s15  }
   0x3   : > { %p25_p0 = scmp.ge.s32.totalorder %s24_s19, 2  ;;  %p725_p1 = scmp.ge.s32.totalorder %s826_s17, 1 }
   0x4   : > { %p161_p2 = scmp.lt.s32.totalorder %s826_s17, 3  ;;  %p879_p4 = scmp.eq.s32.totalorder %s723_s18, 0 }
   0x5   : > { %s1116_s19 = smov (%p25_p0, %s24_s19), 0  ;;  %s174_s24 = sshll.u32 %s1106_s0, 4  ;;  %s175_s24 = int_to_ptr.vmem [resolvable:$true] %s174_s24 }
   0x6   : > { %p875_p3 = pnand %p725_p1, %p161_p2  ;;  %s785_s25 = scalar_lea.vmem %s175_s24, 32 }
   0x7   : > { %p786_p7 = scmp.ne.s32.totalorder %s175_s24, %s785_s25  ;;  %p793_p11 = scmp.lt.s32.totalorder %s175_s24, %s175_s24 }
   0x8   : > { %p744_p5 = pneg %p875_p3  ;;  %p794_p12 = scmp.lt.s32.totalorder %s785_s25, %s785_s25 }
   0xa   : > { %p745_p6 = pnand %p879_p4, %p744_p5  ;;  %p795_p13 = por %p794_p12, %p793_p11 }
   0xc   : > { %p787_p8 = pneg %p745_p6 }
   0xe   : > { %p788_p9 = pnand %p787_p8, %p786_p7 }
  0x10   : > { %p789_p10 = pneg %p788_p9 }
  0x12   : > { %p796_p0 = pnand %p795_p13, %p789_p10 }
  0x14   : > { %799 = shalt.err (!%p796_p0)
}
  0x15   : > { %s828_s26 = smov [#allocation2]   ;;  %211 = sbr.rel (%p875_p3) target bundleno = 259 (0x103), region = 36 }
  0x16   : > { %747 = dma.vmem_to_smem (!%p745_p6), %s175_s24, 32, %s828_s26, [#allocation3]  }
  0x1a   : > { %813 = dma.done.wait (%p879_p4), [#allocation3], 32  }
  0x1b   : > { %815 = vsyncadd (%p879_p4), [#allocation3], 4294967264 }
  0x1c   : > { %217 = sfence }
  0x1d   : > { %s897_s27 = sshll.u32 %s818_s15, 7  ;;  %v334_v0 = vld [vmem:[%s1107_s1] sm:$0xff]  ;;  %p259_p1 = scmp.lt.s32.totalorder %s818_s15, 1 }
  0x1e   : > { %s275_s28 = sld [smem:[#allocation2 + %s897_s27]]  ;;  %s276_s29 = sadd.s32 1, %s897_s27  ;;  %v335_v1 = vld [vmem:[%s1108_s2] sm:$0xff] }
  0x1f   : > { %s277_s30 = sld [smem:[#allocation2 + %s276_s29]]  ;;  %s278_s5 = sadd.s32 2, %s897_s27 }
  0x20   : > { %s279_s6 = sld [smem:[#allocation2 + %s278_s5]]  ;;  %s280_s9 = sadd.s32 3, %s897_s27 }
  0x21   : > { %s281_s10 = sld [smem:[#allocation2 + %s280_s9]]  ;;  %s282_s11 = sadd.s32 4, %s897_s27 }
  0x22   : > { %s283_s14 = sld [smem:[#allocation2 + %s282_s11]]  ;;  %s284_s18 = sadd.s32 5, %s897_s27 }
  0x23   : > { %s285_s20 = sld [smem:[#allocation2 + %s284_s18]]  ;;  %s290_s21 = sadd.s32 8, %s897_s27 }
  0x24   : > { %v337_v2 = vstv %s275_s28  ;;  %s288_s22 = sadd.s32 7, %s897_s27  ;;  %s291_s23 = sld [smem:[#allocation2 + %s290_s21]] }
  0x25   : > { %v338_v3 = vmul.f32 %v337_v2, %v334_v0  ;;  %v339_v4 = vstv %s277_s30  ;;  %s289_s24 = sld [smem:[#allocation2 + %s288_s22]]  ;;  %s286_s25 = sadd.s32 6, %s897_s27 }
  0x26   : > { %v340_v5 = vmul.f32 %v339_v4, %v335_v1  ;;  %v342_v7 = vstv %s279_s6  ;;  %s296_s26 = sadd.s32 11, %s897_s27  ;;  %s287_s28 = sld [smem:[#allocation2 + %s286_s25]] }
  0x27   : > { %v344_v8 = vstv %s281_s10  ;;  %s297_s29 = sld [smem:[#allocation2 + %s296_s26]]  ;;  %s294_s30 = sadd.s32 10, %s897_s27 }
  0x28   : > { %v341_v6 = vadd.f32 %v340_v5, %v338_v3  ;;  %v345_v9 = vmul.f32 %v344_v8, %v334_v0  ;;  %v346_v10 = vstv %s283_s14  ;;  %s298_s5 = sadd.s32 12, %s897_s27  ;;  %s300_s6 = sadd.s32 13, %s897_s27 }
  0x29   : > { %v347_v12 = vmul.f32 %v346_v10, %v335_v1  ;;  %v349_v13 = vstv %s285_s20  ;;  %s295_s7 = sld [smem:[#allocation2 + %s294_s30]]  ;;  %s302_s10 = sadd.s32 14, %s897_s27 }
  0x2a   : > { %v913_v11 = vadd.f32 %v342_v7, %v341_v6  ;;  %v923_v18 = vstv %s291_s23  ;;  %s299_s8 = sld [smem:[#allocation2 + %s298_s5]]  ;;  %s304_s11 = sadd.s32 15, %s897_s27 }
  0x2b   : > { %v348_v14 = vadd.f32 %v347_v12, %v345_v9  ;;  %v927_v20 = vstv %s289_s24  ;;  %s301_s9 = sld [smem:[#allocation2 + %s300_s6]]  ;;  %s292_s12 = sadd.s32 9, %s897_s27 }
  0x2c   : > { %v351_v16 = vmul.f32 %v913_v11, %v913_v11  ;;  %v933_v23 = vstv %s287_s28  ;;  %s303_s13 = sld [smem:[#allocation2 + %s302_s10]]  ;;  %s306_s18 = sadd.s32 16, %s897_s27 }
  0x2d   : > { %v917_v15 = vadd.f32 %v349_v13, %v348_v14  ;;  %v936_v25 = vstv %s297_s29  ;;  %s305_s14 = sld [smem:[#allocation2 + %s304_s11]]  ;;  %s308_s20 = sadd.s32 17, %s897_s27 }
  0x2e   : > { %s293_s21 = sld [smem:[#allocation2 + %s292_s12]]  ;;  %s1118_s15 = smov (!%p259_p1, %s818_s15), 1 }
  0x2f   : > { %v352_v17 = vmul.f32 %v917_v15, %v917_v15  ;;  %v943_v29 = vstv %s295_s7  ;;  %s307_s22 = sld [smem:[#allocation2 + %s306_s18]]  ;;  %v353_v30 = vmul.f32 %v917_v15, %v913_v11  ;;  %s310_s24 = sadd.s32 18, %s897_s27 }
  0x30   : > { %s309_s23 = sld [smem:[#allocation2 + %s308_s20]]  ;;  %v947_v32 = vstv %s299_s8  ;;  %s312_s25 = sadd.s32 19, %s897_s27 }
  0x31   : > { %v354_v19 = vadd.f32 %v352_v17, %v351_v16  ;;  %v949_v33 = vstv %s301_s9  ;;  %v380_v35 = vmul.f32 %v947_v32, %v353_v30  ;;  %v391_v38 = vmul.f32 %v947_v32, %v352_v17  ;;  %s314_s26 = sadd.s32 20, %s897_s27  ;;  %s1039_s28 = sld [smem:[#allocation2 + %s310_s24]] }
  0x32   : > { %v382_v36 = vmul.f32 %v949_v33, %v351_v16  ;;  %v390_v37 = vmul.f32 %v949_v33, %v353_v30  ;;  %v956_v39 = vstv %s303_s13  ;;  %s318_s29 = sadd.s32 22, %s897_s27  ;;  %s1043_s30 = sld [smem:[#allocation2 + %s312_s25]] }
  0x33   : > { %v366_v21 = vmul.f32 %v923_v18, %v354_v19  ;;  %v357_v27 = vmul.f32 %v936_v25, %v354_v19  ;;  %v958_v40 = vstv %s305_s14  ;;  %v355_v42 = vmul.f32 %v354_v19, %v354_v19  ;;  %s320_s5 = sadd.s32 23, %s897_s27  ;;  %s1046_s6 = sld [smem:[#allocation2 + %s314_s26]] }
  0x34   : > { %v960_v43 = vstv %s293_s21  ;;  %v383_v44 = vadd.f32 %v382_v36, %v380_v35  ;;  %v385_v45 = vmul.f32 %v956_v39, %v354_v19  ;;  %v392_v46 = vadd.f32 %v391_v38, %v390_v37  ;;  %s322_s7 = sadd.s32 24, %s897_s27  ;;  %s1051_s8 = sld [smem:[#allocation2 + %s318_s29]] }
  0x35   : > { %v368_v22 = vadd.f32 %v927_v20, %v366_v21  ;;  %v359_v34 = vadd.f32 %v943_v29, %v357_v27  ;;  %v394_v47 = vmul.f32 %v958_v40, %v354_v19  ;;  %v964_v48 = vstv %s307_s22  ;;  %s326_s9 = sadd.s32 26, %s897_s27  ;;  %s1054_s10 = sld [smem:[#allocation2 + %s320_s5]] }
  0x36   : > { %v966_v49 = vstv %s309_s23  ;;  %v386_v51 = vadd.f32 %v385_v45, %v383_v44  ;;  %v388_v52 = vmul.f32 %v964_v48, %v355_v42  ;;  %s328_s11 = sadd.s32 27, %s897_s27  ;;  %s1057_s12 = sld [smem:[#allocation2 + %s322_s7]] }
  0x37   : > { %v369_v24 = vmul.f32 %v368_v22, %v354_v19  ;;  %v360_v41 = vmul.f32 %v359_v34, %v354_v19  ;;  %v395_v53 = vadd.f32 %v394_v47, %v392_v46  ;;  %v397_v54 = vmul.f32 %v966_v49, %v355_v42  ;;  %s330_s13 = sadd.s32 28, %s897_s27  ;;  %s1060_s14 = sld [smem:[#allocation2 + %s326_s9]] }
  0x38   : > { %v389_v58 = vadd.f32 %v388_v52, %v386_v51  ;;  %s732_s18 = sshll.u32 %s1118_s15, 3  ;;  %s1063_s20 = sld [smem:[#allocation2 + %s328_s11]] }
  0x39   : > { %v371_v26 = vadd.f32 %v933_v23, %v369_v24  ;;  %v362_v50 = vadd.f32 %v960_v43, %v360_v41  ;;  %v398_v59 = vadd.f32 %v397_v54, %v395_v53  ;;  %s1065_s21 = sld [smem:[#allocation2 + %s330_s13]]  ;;  %s316_s22 = sadd.s32 21, %s897_s27 }
  0x3a   : > { %v399_v63 = vsub.f32 %v913_v11, %v389_v58  ;;  %s265_s25 = scalar_lea.vmem %s1109_s3, %s732_s18  ;;  %s324_s26 = sadd.s32 25, %s897_s27 }
  0x3b   : > { %v372_v28 = vmul.f32 %v371_v26, %v354_v19  ;;  %v363_v55 = vmul.f32 %v362_v50, %v354_v19  ;;  %v401_v0 = vsub.f32 %v917_v15, %v398_v59  ;;  %s332_s29 = sadd.s32 29, %s897_s27  ;;  %s1075_s5 = sld [smem:[#allocation2 + %s316_s22]] }
  0x3c   : > { %s1077_s7 = sld [smem:[#allocation2 + %s324_s26]]  ;;  %s739_s27 = smul.u32 24, %s1118_s15 }
  0x3d   : > { %v373_v31 = vadd.f32 1.0, %v372_v28  ;;  %v364_v60 = vadd.f32 1.0, %v363_v55  ;;  %s1080_s9 = sld [smem:[#allocation2 + %s332_s29]] }
  0x3f   : > { %775 = vrcp.f32 %v373_v31 }
  0x4c   : > { %v776_v56 = vpop.eup %775 }
  0x4d   : > { %v375_v57 = vmul.f32 %v776_v56, %v373_v31 }
  0x4f   : > { %v376_v61 = vsub.f32 2.0, %v375_v57 }
  0x51   : > { %v377_v62 = vmul.f32 %v776_v56, %v376_v61 }
  0x53   : > { %v378_v1 = vmul.f32 %v377_v62, %v364_v60 }
  0x55   : > { %v400_v2 = vmul.f32 %v399_v63, %v378_v1  ;;  %v402_v3 = vmul.f32 %v401_v0, %v378_v1 }
  0x57   : > { %v403_v4 = vmul.f32 %v400_v2, %v400_v2  ;;  %v404_v5 = vmul.f32 %v402_v3, %v402_v3  ;;  %v405_v14 = vmul.f32 %v402_v3, %v400_v2 }
  0x59   : > { %v406_v6 = vadd.f32 %v404_v5, %v403_v4  ;;  %v425_v19 = vmul.f32 %v405_v14, %v947_v32  ;;  %v426_v21 = vmul.f32 %v403_v4, %v949_v33  ;;  %v432_v22 = vmul.f32 %v405_v14, %v949_v33 }
  0x5a   : > { %v433_v24 = vmul.f32 %v404_v5, %v947_v32 }
  0x5b   : > { %v414_v7 = vmul.f32 %v406_v6, %v923_v18  ;;  %v408_v12 = vmul.f32 %v406_v6, %v936_v25  ;;  %v407_v27 = vmul.f32 %v406_v6, %v406_v6  ;;  %v427_v28 = vadd.f32 %v426_v21, %v425_v19 }
  0x5c   : > { %v428_v30 = vmul.f32 %v406_v6, %v956_v39  ;;  %v434_v31 = vadd.f32 %v433_v24, %v432_v22  ;;  %v435_v34 = vmul.f32 %v406_v6, %v958_v40 }
  0x5d   : > { %v415_v8 = vadd.f32 %v414_v7, %v927_v20  ;;  %v409_v17 = vadd.f32 %v408_v12, %v943_v29  ;;  %v430_v37 = vmul.f32 %v407_v27, %v964_v48  ;;  %v437_v41 = vmul.f32 %v407_v27, %v966_v49 }
  0x5e   : > { %v429_v36 = vadd.f32 %v428_v30, %v427_v28  ;;  %v436_v38 = vadd.f32 %v435_v34, %v434_v31 }
  0x5f   : > { %v416_v9 = vmul.f32 %v415_v8, %v406_v6  ;;  %v410_v26 = vmul.f32 %v409_v17, %v406_v6 }
  0x60   : > { %v431_v46 = vadd.f32 %v430_v37, %v429_v36  ;;  %v438_v47 = vadd.f32 %v437_v41, %v436_v38 }
  0x61   : > { %v417_v10 = vadd.f32 %v416_v9, %v933_v23  ;;  %v411_v35 = vadd.f32 %v410_v26, %v960_v43 }
  0x62   : > { %v439_v53 = vsub.f32 %v913_v11, %v431_v46  ;;  %v441_v54 = vsub.f32 %v917_v15, %v438_v47 }
  0x63   : > { %v418_v13 = vmul.f32 %v417_v10, %v406_v6  ;;  %v412_v42 = vmul.f32 %v411_v35, %v406_v6 }
  0x65   : > { %v419_v16 = vadd.f32 1.0, %v418_v13  ;;  %v413_v50 = vadd.f32 1.0, %v412_v42 }
  0x67   : > { %777 = vrcp.f32 %v419_v16 }
  0x74   : > { %v778_v44 = vpop.eup %777 }
  0x75   : > { %v421_v45 = vmul.f32 %v778_v44, %v419_v16 }
  0x77   : > { %v422_v51 = vsub.f32 2.0, %v421_v45 }
  0x79   : > { %v423_v52 = vmul.f32 %v778_v44, %v422_v51 }
  0x7b   : > { %v424_v55 = vmul.f32 %v423_v52, %v413_v50 }
  0x7d   : > { %v440_v56 = vmul.f32 %v439_v53, %v424_v55  ;;  %v442_v57 = vmul.f32 %v441_v54, %v424_v55 }
  0x7f   : > { %v443_v58 = vmul.f32 %v440_v56, %v440_v56  ;;  %v444_v59 = vmul.f32 %v442_v57, %v442_v57  ;;  %v445_v3 = vmul.f32 %v442_v57, %v440_v56 }
  0x81   : > { %v446_v60 = vadd.f32 %v444_v59, %v443_v58  ;;  %v465_v6 = vmul.f32 %v445_v3, %v947_v32  ;;  %v466_v7 = vmul.f32 %v443_v58, %v949_v33  ;;  %v472_v8 = vmul.f32 %v445_v3, %v949_v33 }
  0x82   : > { %v473_v9 = vmul.f32 %v444_v59, %v947_v32 }
  0x83   : > { %v454_v61 = vmul.f32 %v446_v60, %v923_v18  ;;  %v448_v1 = vmul.f32 %v446_v60, %v936_v25  ;;  %v447_v12 = vmul.f32 %v446_v60, %v446_v60  ;;  %v467_v13 = vadd.f32 %v466_v7, %v465_v6 }
  0x84   : > { %v468_v14 = vmul.f32 %v446_v60, %v956_v39  ;;  %v474_v16 = vadd.f32 %v473_v9, %v472_v8  ;;  %v475_v17 = vmul.f32 %v446_v60, %v958_v40 }
  0x85   : > { %v455_v62 = vadd.f32 %v454_v61, %v927_v20  ;;  %v449_v5 = vadd.f32 %v448_v1, %v943_v29  ;;  %v470_v22 = vmul.f32 %v447_v12, %v964_v48  ;;  %v477_v26 = vmul.f32 %v447_v12, %v966_v49 }
  0x86   : > { %v469_v21 = vadd.f32 %v468_v14, %v467_v13  ;;  %v476_v24 = vadd.f32 %v475_v17, %v474_v16 }
  0x87   : > { %v456_v63 = vmul.f32 %v455_v62, %v446_v60  ;;  %v450_v10 = vmul.f32 %v449_v5, %v446_v60 }
  0x88   : > { %v471_v31 = vadd.f32 %v470_v22, %v469_v21  ;;  %v478_v34 = vadd.f32 %v477_v26, %v476_v24 }
  0x89   : > { %v457_v0 = vadd.f32 %v456_v63, %v933_v23  ;;  %v451_v19 = vadd.f32 %v450_v10, %v960_v43 }
  0x8a   : > { %v479_v38 = vsub.f32 %v913_v11, %v471_v31  ;;  %v481_v41 = vsub.f32 %v917_v15, %v478_v34 }
  0x8b   : > { %v458_v2 = vmul.f32 %v457_v0, %v446_v60  ;;  %v452_v27 = vmul.f32 %v451_v19, %v446_v60 }
  0x8d   : > { %v459_v4 = vadd.f32 1.0, %v458_v2  ;;  %v453_v35 = vadd.f32 1.0, %v452_v27 }
  0x8f   : > { %779 = vrcp.f32 %v459_v4 }
  0x9c   : > { %v780_v28 = vpop.eup %779 }
  0x9d   : > { %v461_v30 = vmul.f32 %v780_v28, %v459_v4 }
  0x9f   : > { %v462_v36 = vsub.f32 2.0, %v461_v30 }
  0xa1   : > { %v463_v37 = vmul.f32 %v780_v28, %v462_v36 }
  0xa3   : > { %v464_v42 = vmul.f32 %v463_v37, %v453_v35 }
  0xa5   : > { %v480_v44 = vmul.f32 %v479_v38, %v464_v42  ;;  %v482_v45 = vmul.f32 %v481_v41, %v464_v42 }
  0xa7   : > { %v483_v46 = vmul.f32 %v480_v44, %v480_v44  ;;  %v484_v47 = vmul.f32 %v482_v45, %v482_v45  ;;  %v485_v57 = vmul.f32 %v482_v45, %v480_v44 }
  0xa9   : > { %v486_v50 = vadd.f32 %v484_v47, %v483_v46  ;;  %v505_v60 = vmul.f32 %v485_v57, %v947_v32  ;;  %v506_v61 = vmul.f32 %v483_v46, %v949_v33  ;;  %v512_v62 = vmul.f32 %v485_v57, %v949_v33 }
  0xaa   : > { %v513_v63 = vmul.f32 %v484_v47, %v947_v32 }
  0xab   : > { %v494_v51 = vmul.f32 %v486_v50, %v923_v18  ;;  %v488_v55 = vmul.f32 %v486_v50, %v936_v25  ;;  %v487_v1 = vmul.f32 %v486_v50, %v486_v50  ;;  %v507_v2 = vadd.f32 %v506_v61, %v505_v60 }
  0xac   : > { %v508_v3 = vmul.f32 %v486_v50, %v956_v39  ;;  %v514_v4 = vadd.f32 %v513_v63, %v512_v62  ;;  %v515_v5 = vmul.f32 %v486_v50, %v958_v40 }
  0xad   : > { %v495_v52 = vadd.f32 %v494_v51, %v927_v20  ;;  %v489_v59 = vadd.f32 %v488_v55, %v943_v29  ;;  %v510_v8 = vmul.f32 %v487_v1, %v964_v48  ;;  %v517_v10 = vmul.f32 %v487_v1, %v966_v49 }
  0xae   : > { %v509_v7 = vadd.f32 %v508_v3, %v507_v2  ;;  %v516_v9 = vadd.f32 %v515_v5, %v514_v4  ;;  %v565_v1 = vstv %s1039_s28  ;;  %v570_v4 = vstv %s1046_s6  ;;  %s273_s6 = scalar_lea.vmem %s1110_s4, %s739_s27 }
  0xaf   : > { %v496_v53 = vmul.f32 %v495_v52, %v486_v50  ;;  %v490_v0 = vmul.f32 %v489_v59, %v486_v50  ;;  %v567_v5 = vstv %s1043_s30 }
  0xb0   : > { %v511_v16 = vadd.f32 %v510_v8, %v509_v7  ;;  %v518_v17 = vadd.f32 %v517_v10, %v516_v9  ;;  %v588_v7 = vstv %s1060_s14  ;;  %v590_v10 = vstv %s1063_s20 }
  0xb1   : > { %v497_v54 = vadd.f32 %v496_v53, %v933_v23  ;;  %v491_v6 = vadd.f32 %v490_v0, %v960_v43  ;;  %v336_v0 = vld [vmem:[%s265_s25] sm:$0xff] }
  0xb2   : > { %v519_v24 = vsub.f32 %v913_v11, %v511_v16  ;;  %v521_v26 = vsub.f32 %v917_v15, %v518_v17 }
  0xb3   : > { %v498_v56 = vmul.f32 %v497_v54, %v486_v50  ;;  %v492_v12 = vmul.f32 %v491_v6, %v486_v50  ;;  %v576_v6 = vstv %s1051_s8 }
  0xb5   : > { %v499_v58 = vadd.f32 1.0, %v498_v56  ;;  %v493_v19 = vadd.f32 1.0, %v492_v12  ;;  %v593_v12 = vstv %s1065_s21 }
  0xb7   : > { %781 = vrcp.f32 %v499_v58 }
  0xc4   : > { %v782_v13 = vpop.eup %781 }
  0xc5   : > { %v501_v14 = vmul.f32 %v782_v13, %v499_v58 }
  0xc7   : > { %v502_v21 = vsub.f32 2.0, %v501_v14 }
  0xc9   : > { %v503_v22 = vmul.f32 %v782_v13, %v502_v21  ;;  %v571_v13 = vmul.f32 %v570_v4, %v336_v0 }
  0xcb   : > { %v504_v27 = vmul.f32 %v503_v22, %v493_v19 }
  0xcd   : > { %v520_v28 = vmul.f32 %v519_v24, %v504_v27  ;;  %v522_v30 = vmul.f32 %v521_v26, %v504_v27  ;;  %v594_v26 = vmul.f32 %v593_v12, %v336_v0 }
  0xcf   : > { %v523_v31 = vmul.f32 %v520_v28, %v520_v28  ;;  %v524_v34 = vmul.f32 %v522_v30, %v522_v30  ;;  %v525_v45 = vmul.f32 %v522_v30, %v520_v28  ;;  %v573_v30 = vstv %s1075_s5 }
  0xd1   : > { %v526_v35 = vadd.f32 %v524_v34, %v523_v31  ;;  %v552_v50 = vmul.f32 %v525_v45, %v949_v33 }
  0xd3   : > { %v534_v36 = vmul.f32 %v526_v35, %v923_v18  ;;  %v528_v42 = vmul.f32 %v526_v35, %v936_v25  ;;  %v545_v18 = vmul.f32 %v525_v45, %v947_v32  ;;  %v527_v51 = vmul.f32 %v526_v35, %v526_v35 }
  0xd4   : > { %v555_v54 = vmul.f32 %v526_v35, %v958_v40 }
  0xd5   : > { %v535_v37 = vadd.f32 %v534_v36, %v927_v20  ;;  %v529_v47 = vadd.f32 %v528_v42, %v943_v29  ;;  %v546_v20 = vmul.f32 %v523_v31, %v949_v33  ;;  %v548_v29 = vmul.f32 %v526_v35, %v956_v39 }
  0xd6   : > { %v550_v39 = vmul.f32 %v527_v51, %v964_v48  ;;  %v557_v40 = vmul.f32 %v527_v51, %v966_v49  ;;  %v584_v31 = vstv %s1077_s7 }
  0xd7   : > { %v536_v38 = vmul.f32 %v535_v37, %v526_v35  ;;  %v530_v25 = vmul.f32 %v529_v47, %v526_v35  ;;  %v547_v52 = vadd.f32 %v546_v20, %v545_v18  ;;  %v596_v37 = vstv %s1080_s9 }
  0xd9   : > { %v537_v41 = vadd.f32 %v536_v38, %v933_v23  ;;  %v553_v23 = vmul.f32 %v524_v34, %v947_v32  ;;  %v531_v32 = vadd.f32 %v530_v25, %v960_v43  ;;  %v549_v33 = vadd.f32 %v548_v29, %v547_v52 }
  0xdb   : > { %v538_v44 = vmul.f32 %v537_v41, %v526_v35  ;;  %v554_v53 = vadd.f32 %v553_v23, %v552_v50  ;;  %v532_v43 = vmul.f32 %v531_v32, %v526_v35  ;;  %v551_v57 = vadd.f32 %v550_v39, %v549_v33 }
  0xdd   : > { %v539_v46 = vadd.f32 1.0, %v538_v44  ;;  %v556_v55 = vadd.f32 %v555_v54, %v554_v53  ;;  %v533_v49 = vadd.f32 1.0, %v532_v43  ;;  %v559_v61 = vsub.f32 %v913_v11, %v551_v57 }
  0xde   : > { %v581_v11 = vstv %s1057_s12 }
  0xdf   : > { %783 = vrcp.f32 %v539_v46  ;;  %v558_v58 = vadd.f32 %v557_v40, %v556_v55  ;;  %v582_v14 = vmul.f32 %v581_v11, %v336_v0 }
  0xe1   : > { %v561_v62 = vsub.f32 %v917_v15, %v558_v58  ;;  %v578_v15 = vstv %s1054_s10 }
  0xec   : > { %v784_v56 = vpop.eup %783 }
  0xed   : > { %v541_v48 = vmul.f32 %v784_v56, %v539_v46 }
  0xef   : > { %v542_v59 = vsub.f32 2.0, %v541_v48 }
  0xf1   : > { %v543_v60 = vmul.f32 %v784_v56, %v542_v59 }
  0xf3   : > { %v544_v63 = vmul.f32 %v543_v60, %v533_v49 }
  0xf5   : > { %v560_v2 = vmul.f32 %v559_v61, %v544_v63  ;;  %v562_v3 = vmul.f32 %v561_v62, %v544_v63 }
  0xf7   : > { %v563_v8 = vmul.f32 %v560_v2, %v336_v0  ;;  %v564_v9 = vmul.f32 %v562_v3, %v336_v0 }
  0xf9   : > { %v566_v16 = vmul.f32 %v565_v1, %v563_v8  ;;  %v568_v17 = vmul.f32 %v567_v5, %v564_v9  ;;  %v577_v19 = vmul.f32 %v576_v6, %v563_v8  ;;  %v579_v21 = vmul.f32 %v578_v15, %v564_v9 }
  0xfa   : > { %v589_v22 = vmul.f32 %v588_v7, %v563_v8  ;;  %v591_v24 = vmul.f32 %v590_v10, %v564_v9 }
  0xfb   : > { %v569_v27 = vadd.f32 %v568_v17, %v566_v16  ;;  %v580_v28 = vadd.f32 %v579_v21, %v577_v19 }
  0xfc   : > { %v592_v34 = vadd.f32 %v591_v24, %v589_v22 }
  0xfd   : > { %v572_v35 = vadd.f32 %v571_v13, %v569_v27  ;;  %v583_v36 = vadd.f32 %v582_v14, %v580_v28 }
  0xfe   : > { %v595_v38 = vadd.f32 %v594_v26, %v592_v34 }
  0xff   : > { %v574_v41 = vadd.f32 %v573_v30, %v572_v35  ;;  %v585_v42 = vadd.f32 %v584_v31, %v583_v36 }
 0x100   : > { %v597_v44 = vadd.f32 %v596_v37, %v595_v38 }
 0x101   : > { %575 = vst [vmem:[%s273_s6] sm:$0xff] %v574_v41  ;;  %735 = vst [vmem:[%s273_s6 + $0x8] sm:$0xff] %v585_v42 }
 0x102   : > { %736 = vst [vmem:[%s273_s6 + $0x10] sm:$0xff] %v597_v44 }
 0x103 PF: > { %s15_s17 = sadd.s32 1, %s826_s17   ;;  %s1113_s15 = smov %s822_s16 }
 0x104   : > { %p12_p2 = scmp.ge.s32.totalorder %s15_s17, 4   ;;  %s1114_s16 = smov %s1116_s19 }
 0x106   :  { %14 = sbr.rel (!%p12_p2) target bundleno = 2 (0x2), region = 79 }
 0x10b   :  { %627 = vsyncpa [#allocation3], 1 }
 0x10c   :  { %629 = vsyncpa [#allocation3 + $0x1], 1 }

</bundles_post_ra>
